<compile_context>
chip_gen: v7x
topology: tpu7x:2x2x1
jax: 0.10.0
libtpu: 0.0.40
codegen_flags: <defaults>
</compile_context>

<pallas_src>
import jax
import jax.numpy as jnp
from jax.experimental import pallas as pl
from jax.experimental.pallas import tpu as pltpu

EPS = 1e-15
LANE = 128


# ----------------------------------------------------------------------------
# Fused forward math (identical trace used by the Pallas kernel and the
# matched-precision XLA reference)
# ----------------------------------------------------------------------------
def _elu(x):
    return jnp.where(x > 0, x, jnp.exp(jnp.minimum(x, 0.0)) - 1.0)


def _gmmnet_math(x_bf, pquad, src_oh, agg0, inv_deg,
                 w1g, w1r, b1, w2g, w2r, b2,
                 gW, gc, exp1, red1, exp2, red2):
    """conv1 + ELU + conv2. Large node/edge matmuls run bf16 on the MXU with
    f32 accumulation; gauss weights, scatter, 1/deg, adds, ELU stay f32."""
    f32, bf16 = jnp.float32, jnp.bfloat16

    # Gaussian mixture weights for BOTH layers with ONE matmul + ONE exp pass:
    #   log w = [p^2 | p] @ [A; B] + c       (A/B/c hoisted to the wrapper)
    gauss = jnp.exp(jnp.dot(pquad, gW, preferred_element_type=f32) + gc)  # (E, 2K)

    # 0/1 target matrix; keep the scatter matmul in f32 so the edge messages
    # are only rounded once (at the bf16 gather operand).
    agg0_f = agg0.astype(f32)                                             # (N, E)

    def gmm_layer(feat_bf, g, root, b, exp_mat, red_mat):
        xg = jnp.dot(feat_bf, g, preferred_element_type=f32)          # (N, KM)
        xroot = jnp.dot(feat_bf, root, preferred_element_type=f32)    # (N, Mo)
        # Gather source rows via the 0/1 one-hot matmul (exact in bf16).
        xg_src = jnp.dot(src_oh, xg.astype(bf16),
                         preferred_element_type=f32)                  # (E, KM)
        # Layer selection + lane replication of gauss in one precomputed
        # (2K, KM) 0/1 matmul: no sub-tile slicing, lane-dense result.
        g_rep = jnp.dot(gauss, exp_mat, preferred_element_type=f32)   # (E, KM)
        weighted = xg_src * g_rep                                     # (E, KM) f32
        # Scatter-add with the 0/1 target matrix (f32), reduce the K groups,
        # apply the 1/deg mean normalization, add root transform + bias.
        aggw = jnp.dot(agg0_f, weighted, preferred_element_type=f32)  # (N, KM)
        conv = jnp.dot(aggw, red_mat, preferred_element_type=f32)     # (N, Mo)
        return conv * inv_deg + xroot + b

    h = _elu(gmm_layer(x_bf, w1g, w1r, b1, exp1, red1))               # conv1+ELU
    return gmm_layer(h.astype(bf16), w2g, w2r, b2, exp2, red2)        # conv2 (lane-padded)


# ----------------------------------------------------------------------------
# Pallas kernel: whole GMMNet forward in one grid-less invocation (all VMEM)
# ----------------------------------------------------------------------------
def gmmnet_kernel(*refs):
    *in_refs, out_ref = refs
    out = _gmmnet_math(*[r[...] for r in in_refs])
    out_ref[...] = out.astype(out_ref.dtype)


# ----------------------------------------------------------------------------
# Plain-JAX glue: dense edge operators, fused/hoisted constants, padding
# ----------------------------------------------------------------------------
def prepare_inputs(x, edge_index, params1, params2):
    N, _ = x.shape
    row, col = edge_index[0], edge_index[1]
    pseudo = x[row] - x[col]                                   # (E, D)
    E, D = pseudo.shape
    K = params1["mu"].shape[0]
    M1 = params1["root"].shape[1]
    M2 = params2["root"].shape[1]
    M2p = ((M2 + LANE - 1) // LANE) * LANE                     # lane-dense output width

    # Dense edge operators (0/1 is exact in bf16 -> halves their DMA bytes).
    src_oh = jax.nn.one_hot(row, N, dtype=jnp.bfloat16)        # (E, N)
    dst_oh = jax.nn.one_hot(col, N, dtype=jnp.float32)         # (E, N)
    deg = jnp.sum(dst_oh, axis=0)
    inv_deg = (1.0 / jnp.maximum(deg, 1.0)).reshape(N, 1)      # f32 mean norm
    agg0 = dst_oh.T.astype(jnp.bfloat16)                       # (N, E)

    # Quadratic-form constants of the Gaussian exponent, fused across layers:
    #   log w = p^2 @ A + p @ B + c   ->  [p^2 | p] @ [A; B] + c
    def quad(mu, sigma):
        inv_var = 1.0 / (EPS + sigma * sigma)                      # (K, D)
        A = (-0.5 * inv_var).T                                     # (D, K)
        B = (mu * inv_var).T                                       # (D, K)
        c = jnp.sum(-0.5 * mu * mu * inv_var, axis=1)[None, :]     # (1, K)
        return A, B, c

    A1, B1, c1 = quad(params1["mu"], params1["sigma"])
    A2, B2, c2 = quad(params2["mu"], params2["sigma"])
    gW = jnp.concatenate([jnp.concatenate([A1, A2], axis=1),
                          jnp.concatenate([B1, B2], axis=1)], axis=0)  # (2D, 2K)
    gc = jnp.concatenate([c1, c2], axis=1)                              # (1, 2K)
    pquad = jnp.concatenate([pseudo * pseudo, pseudo], axis=1)          # (E, 2D)

    # Hoisted 0/1 selection / replication / reduction matrices.
    def expand_select(k_off, M):
        # (2K, K*M): row (k_off+k) -> lanes [k*M, (k+1)*M)   (layer select + replicate)
        r = jax.lax.broadcasted_iota(jnp.int32, (2 * K, K * M), 0)
        c = jax.lax.broadcasted_iota(jnp.int32, (2 * K, K * M), 1)
        return ((c // M + k_off) == r).astype(jnp.float32)

    def reduce_mat(M, Mo):
        # (K*M, Mo): sums the K kernel groups; columns >= M stay zero (lane pad)
        r = jax.lax.broadcasted_iota(jnp.int32, (K * M, Mo), 0)
        c = jax.lax.broadcasted_iota(jnp.int32, (K * M, Mo), 1)
        return ((r % M) == c).astype(jnp.float32)

    exp1 = expand_select(0, M1)                                # (2K, K*M1)
    exp2 = expand_select(K, M2)                                # (2K, K*M2)
    red1 = reduce_mat(M1, M1)                                  # (K*M1, M1)
    red2 = reduce_mat(M2, M2p)                                 # (K*M2, M2p)

    # Weights pre-cast to bf16; layer-2 root/bias padded to the lane-dense width.
    w1g = params1["g"].astype(jnp.bfloat16)                    # (IN, K*M1)
    w1r = params1["root"].astype(jnp.bfloat16)                 # (IN, M1)
    w2g = params2["g"].astype(jnp.bfloat16)                    # (M1, K*M2)
    w2r = jnp.zeros((M1, M2p), jnp.float32).at[:, :M2].set(
        params2["root"]).astype(jnp.bfloat16)                  # (M1, M2p)
    b1 = params1["bias"]                                       # (1, M1) f32
    b2 = jnp.zeros((1, M2p), jnp.float32).at[:, :M2].set(params2["bias"])
    x_bf = x.astype(jnp.bfloat16)

    inputs = (x_bf, pquad, src_oh, agg0, inv_deg,
              w1g, w1r, b1, w2g, w2r, b2,
              gW, gc, exp1, red1, exp2, red2)
    dims = dict(N=N, E=E, D=D, IN=x.shape[1], K=K, M1=M1, M2=M2, M2p=M2p)
    return inputs, dims


def gmmnet_pallas(inputs, dims):
    N, E, D, IN = dims["N"], dims["E"], dims["D"], dims["IN"]
    K, M1, M2, M2p = dims["K"], dims["M1"], dims["M2"], dims["M2p"]
    KM1, KM2 = K * M1, K * M2

    mxu_macs = (
        E * (2 * D) * (2 * K)                          # fused gauss-logit matmul
        + N * IN * (KM1 + M1)                          # x @ g1, x @ root1
        + E * N * KM1 + E * (2 * K) * KM1              # gather + gauss replication (1)
        + N * E * KM1 + N * KM1 * M1                   # scatter + K-reduce (1)
        + N * M1 * (KM2 + M2p)                         # h @ g2, h @ root2 (padded)
        + E * N * KM2 + E * (2 * K) * KM2              # gather + gauss replication (2)
        + N * E * KM2 + N * KM2 * M2p)                 # scatter + K-reduce (2)
    flops = 2 * mxu_macs
    transcendentals = 2 * E * K + N * M1               # gauss exps + ELU exps
    bytes_accessed = int(sum(a.size * a.dtype.itemsize for a in inputs)
                         + N * M2p * 4)

    out_pad = pl.pallas_call(
        gmmnet_kernel,
        out_shape=jax.ShapeDtypeStruct((N, M2p), jnp.float32),
        in_specs=[pl.BlockSpec(memory_space=pltpu.MemorySpace.VMEM)] * len(inputs),
        out_specs=pl.BlockSpec(memory_space=pltpu.MemorySpace.VMEM),
        compiler_params=pltpu.CompilerParams(vmem_limit_bytes=64 * 1024 * 1024),
        cost_estimate=pl.CostEstimate(flops=flops,
                                      transcendentals=transcendentals,
                                      bytes_accessed=bytes_accessed),
    )(*inputs)
    return out_pad[:, :M2]                              # drop the lane padding


def gmmnet_forward(x, edge_index, params1, params2):
    inputs, dims = prepare_inputs(x, edge_index, params1, params2)
    return gmmnet_pallas(inputs, dims)


# ----------------------------------------------------------------------------
# Graph construction, params, pure-f32 PyG-semantics reference
# ----------------------------------------------------------------------------
def build_knn_graph(coords, k):
    """Deterministic kNN graph (mimics kneighbors_graph)."""
    N = coords.shape[0]
    d2 = jnp.sum((coords[:, None, :] - coords[None, :, :]) ** 2, axis=-1)
    d2 = d2 + jnp.eye(N) * 1e9                                  # exclude self
    nbr = jnp.argsort(d2, axis=1)[:, :k]                        # (N, k)
    row = jnp.repeat(jnp.arange(N), k)                          # (E,)
    col = nbr.reshape(-1)                                       # (E,)
    return jnp.stack([row, col], axis=0)                        # (2, E)


def glorot(key, shape):
    fan_in, fan_out = shape[0], shape[1]
    lim = (6.0 / (fan_in + fan_out)) ** 0.5
    return jax.random.uniform(key, shape, jnp.float32, -lim, lim)


def init_gmm_conv_params(key, in_ch, out_ch, dim, kernel_size):
    k_g, k_mu, k_sig, k_root = jax.random.split(key, 4)
    return {
        "g": glorot(k_g, (in_ch, out_ch * kernel_size)),
        "mu": jax.random.uniform(k_mu, (kernel_size, dim), jnp.float32, -1.0, 1.0),
        "sigma": jax.random.uniform(k_sig, (kernel_size, dim), jnp.float32, 0.5, 1.5),
        "root": glorot(k_root, (in_ch, out_ch)),
        "bias": jnp.zeros((1, out_ch), jnp.float32),
    }


def gmm_conv_ref(x, pseudo, edge_index, p, *, apply_elu):
    """Pure-JAX f32 reference matching PyG GMMConv semantics."""
    N = x.shape[0]
    row, col = edge_index[0], edge_index[1]
    K = p["mu"].shape[0]
    M = p["root"].shape[1]
    E = pseudo.shape[0]
    xg_src = (x @ p["g"])[row].reshape(E, K, M)
    diff = pseudo[:, None, :] - p["mu"][None]
    gauss = jnp.exp(jnp.sum(-0.5 * diff ** 2 / (EPS + p["sigma"][None] ** 2), axis=-1))
    msg = (xg_src * gauss[..., None]).sum(axis=1)               # (E, M)
    deg = jnp.zeros((N,), jnp.float32).at[col].add(1.0)
    out = jnp.zeros((N, M), jnp.float32).at[col].add(msg)
    out = out / jnp.maximum(deg, 1.0)[:, None]
    out = out + x @ p["root"] + p["bias"]
    if apply_elu:
        out = _elu(out)
    return out


def gmmnet_ref_f32(x, edge_index, params1, params2):
    row, col = edge_index[0], edge_index[1]
    pseudo = x[row] - x[col]
    h = gmm_conv_ref(x, pseudo, edge_index, params1, apply_elu=True)
    return gmm_conv_ref(h, pseudo, edge_index, params2, apply_elu=False)


# ----------------------------------------------------------------------------
if __name__ == "__main__":
    # GMMNet(in_channels=2, out_channels=1, dim=2, kernel_size=4); hidden=16
    N, IN_CH, HIDDEN, OUT_CH, DIM, KSZ, KNN = 32, 2, 16, 1, 2, 4, 7

    key = jax.random.PRNGKey(0)
    k_coords, k_p1, k_p2 = jax.random.split(key, 3)

    coords = jax.random.normal(k_coords, (N, IN_CH), dtype=jnp.float32)  # data.x
    edge_index = build_knn_graph(coords, KNN)                            # (2, N*KNN)

    params1 = init_gmm_conv_params(k_p1, IN_CH, HIDDEN, DIM, KSZ)   # conv1: 2 -> 16
    params2 = init_gmm_conv_params(k_p2, HIDDEN, OUT_CH, DIM, KSZ)  # conv2: 16 -> 1

    inputs, dims = prepare_inputs(coords, edge_index, params1, params2)
    out = jax.block_until_ready(gmmnet_pallas(inputs, dims))

    # (1) Identical-precision XLA trace of the same math: validates the Pallas
    #     lowering tightly.
    matched = jax.block_until_ready(_gmmnet_math(*inputs))[:, :dims["M2"]]
    # (2) Full-f32 PyG-semantics reference: bounds the bf16-MXU drift of the
    #     two-layer network (looser tolerance by design).
    ref = jax.block_until_ready(gmmnet_ref_f32(coords, edge_index, params1, params2))

    assert out.shape == (N, OUT_CH), out.shape
    assert jnp.allclose(out, matched, atol=2e-3, rtol=2e-3), \
        float(jnp.max(jnp.abs(out - matched)))
    assert jnp.allclose(out, ref, atol=1e-1, rtol=1e-1), \
        float(jnp.max(jnp.abs(out - ref)))

    print("KERNEL_OK")
</pallas_src>

<mosaic_0001>
module attributes {stable_mosaic.version = 11 : i64} {
  func.func @gmmnet_kernel(%arg0: memref<32x2xbf16, #tpu.memory_space<vmem>>, %arg1: memref<224x4xf32, #tpu.memory_space<vmem>>, %arg2: memref<224x32xbf16, #tpu.memory_space<vmem>>, %arg3: memref<32x224xbf16, #tpu.memory_space<vmem>>, %arg4: memref<32x1xf32, #tpu.memory_space<vmem>>, %arg5: memref<2x64xbf16, #tpu.memory_space<vmem>>, %arg6: memref<2x16xbf16, #tpu.memory_space<vmem>>, %arg7: memref<1x16xf32, #tpu.memory_space<vmem>>, %arg8: memref<16x4xbf16, #tpu.memory_space<vmem>>, %arg9: memref<16x128xbf16, #tpu.memory_space<vmem>>, %arg10: memref<1x128xf32, #tpu.memory_space<vmem>>, %arg11: memref<4x8xf32, #tpu.memory_space<vmem>>, %arg12: memref<1x8xf32, #tpu.memory_space<vmem>>, %arg13: memref<8x64xf32, #tpu.memory_space<vmem>>, %arg14: memref<64x16xf32, #tpu.memory_space<vmem>>, %arg15: memref<8x4xf32, #tpu.memory_space<vmem>>, %arg16: memref<4x128xf32, #tpu.memory_space<vmem>>, %arg17: memref<32x128xf32, #tpu.memory_space<vmem>>) attributes {dimension_semantics = [], scalar_prefetch = 0 : i64, scratch_operands = 0 : i64, tpu.core_type = #tpu.core_type<tc>} {
    %c0 = arith.constant 0 : index
    %c0_0 = arith.constant 0 : index
    %0 = vector.load %arg0[%c0, %c0_0] : memref<32x2xbf16, #tpu.memory_space<vmem>>, vector<32x2xbf16>
    %c0_1 = arith.constant 0 : index
    %c0_2 = arith.constant 0 : index
    %1 = vector.load %arg1[%c0_1, %c0_2] : memref<224x4xf32, #tpu.memory_space<vmem>>, vector<224x4xf32>
    %c0_3 = arith.constant 0 : index
    %c0_4 = arith.constant 0 : index
    %2 = vector.load %arg2[%c0_3, %c0_4] : memref<224x32xbf16, #tpu.memory_space<vmem>>, vector<224x32xbf16>
    %c0_5 = arith.constant 0 : index
    %c0_6 = arith.constant 0 : index
    %3 = vector.load %arg3[%c0_5, %c0_6] : memref<32x224xbf16, #tpu.memory_space<vmem>>, vector<32x224xbf16>
    %c0_7 = arith.constant 0 : index
    %c0_8 = arith.constant 0 : index
    %4 = vector.load %arg4[%c0_7, %c0_8] : memref<32x1xf32, #tpu.memory_space<vmem>>, vector<32x1xf32>
    %c0_9 = arith.constant 0 : index
    %c0_10 = arith.constant 0 : index
    %5 = vector.load %arg5[%c0_9, %c0_10] : memref<2x64xbf16, #tpu.memory_space<vmem>>, vector<2x64xbf16>
    %c0_11 = arith.constant 0 : index
    %c0_12 = arith.constant 0 : index
    %6 = vector.load %arg6[%c0_11, %c0_12] : memref<2x16xbf16, #tpu.memory_space<vmem>>, vector<2x16xbf16>
    %c0_13 = arith.constant 0 : index
    %c0_14 = arith.constant 0 : index
    %7 = vector.load %arg7[%c0_13, %c0_14] : memref<1x16xf32, #tpu.memory_space<vmem>>, vector<1x16xf32>
    %c0_15 = arith.constant 0 : index
    %c0_16 = arith.constant 0 : index
    %8 = vector.load %arg8[%c0_15, %c0_16] : memref<16x4xbf16, #tpu.memory_space<vmem>>, vector<16x4xbf16>
    %c0_17 = arith.constant 0 : index
    %c0_18 = arith.constant 0 : index
    %9 = vector.load %arg9[%c0_17, %c0_18] : memref<16x128xbf16, #tpu.memory_space<vmem>>, vector<16x128xbf16>
    %c0_19 = arith.constant 0 : index
    %c0_20 = arith.constant 0 : index
    %10 = vector.load %arg10[%c0_19, %c0_20] : memref<1x128xf32, #tpu.memory_space<vmem>>, vector<1x128xf32>
    %c0_21 = arith.constant 0 : index
    %c0_22 = arith.constant 0 : index
    %11 = vector.load %arg11[%c0_21, %c0_22] : memref<4x8xf32, #tpu.memory_space<vmem>>, vector<4x8xf32>
    %c0_23 = arith.constant 0 : index
    %c0_24 = arith.constant 0 : index
    %12 = vector.load %arg12[%c0_23, %c0_24] : memref<1x8xf32, #tpu.memory_space<vmem>>, vector<1x8xf32>
    %c0_25 = arith.constant 0 : index
    %c0_26 = arith.constant 0 : index
    %13 = vector.load %arg13[%c0_25, %c0_26] : memref<8x64xf32, #tpu.memory_space<vmem>>, vector<8x64xf32>
    %c0_27 = arith.constant 0 : index
    %c0_28 = arith.constant 0 : index
    %14 = vector.load %arg14[%c0_27, %c0_28] : memref<64x16xf32, #tpu.memory_space<vmem>>, vector<64x16xf32>
    %c0_29 = arith.constant 0 : index
    %c0_30 = arith.constant 0 : index
    %15 = vector.load %arg15[%c0_29, %c0_30] : memref<8x4xf32, #tpu.memory_space<vmem>>, vector<8x4xf32>
    %c0_31 = arith.constant 0 : index
    %c0_32 = arith.constant 0 : index
    %16 = vector.load %arg16[%c0_31, %c0_32] : memref<4x128xf32, #tpu.memory_space<vmem>>, vector<4x128xf32>
    %cst = arith.constant dense<0.000000e+00> : vector<224x8xf32>
    %17 = tpu.matmul %1, %11, %cst {dimension_numbers = #tpu.dot_dimension_numbers<[1], [0], [0], [1], [0, 0, 1, 1], [], []>} : vector<224x4xf32>, vector<4x8xf32>, vector<224x8xf32> -> vector<224x8xf32>
    %18 = vector.broadcast %12 : vector<1x8xf32> to vector<224x8xf32>
    %19 = arith.addf %17, %18 : vector<224x8xf32>
    %20 = math.exp %19 : vector<224x8xf32>
    %21 = arith.extf %3 : vector<32x224xbf16> to vector<32x224xf32>
    %cst_33 = arith.constant dense<0.000000e+00> : vector<32x64xf32>
    %22 = tpu.matmul %0, %5, %cst_33 {dimension_numbers = #tpu.dot_dimension_numbers<[1], [0], [0], [1], [0, 0, 1, 1], [], []>} : vector<32x2xbf16>, vector<2x64xbf16>, vector<32x64xf32> -> vector<32x64xf32>
    %cst_34 = arith.constant dense<0.000000e+00> : vector<32x16xf32>
    %23 = tpu.matmul %0, %6, %cst_34 {dimension_numbers = #tpu.dot_dimension_numbers<[1], [0], [0], [1], [0, 0, 1, 1], [], []>} : vector<32x2xbf16>, vector<2x16xbf16>, vector<32x16xf32> -> vector<32x16xf32>
    %24 = arith.truncf %22 : vector<32x64xf32> to vector<32x64xbf16>
    %cst_35 = arith.constant dense<0.000000e+00> : vector<224x64xf32>
    %25 = tpu.matmul %2, %24, %cst_35 {dimension_numbers = #tpu.dot_dimension_numbers<[1], [0], [0], [1], [0, 0, 1, 1], [], []>} : vector<224x32xbf16>, vector<32x64xbf16>, vector<224x64xf32> -> vector<224x64xf32>
    %cst_36 = arith.constant dense<0.000000e+00> : vector<224x64xf32>
    %26 = tpu.matmul %20, %13, %cst_36 {dimension_numbers = #tpu.dot_dimension_numbers<[1], [0], [0], [1], [0, 0, 1, 1], [], []>} : vector<224x8xf32>, vector<8x64xf32>, vector<224x64xf32> -> vector<224x64xf32>
    %27 = arith.mulf %25, %26 : vector<224x64xf32>
    %cst_37 = arith.constant dense<0.000000e+00> : vector<32x64xf32>
    %28 = tpu.matmul %21, %27, %cst_37 {dimension_numbers = #tpu.dot_dimension_numbers<[1], [0], [0], [1], [0, 0, 1, 1], [], []>} : vector<32x224xf32>, vector<224x64xf32>, vector<32x64xf32> -> vector<32x64xf32>
    %cst_38 = arith.constant dense<0.000000e+00> : vector<32x16xf32>
    %29 = tpu.matmul %28, %14, %cst_38 {dimension_numbers = #tpu.dot_dimension_numbers<[1], [0], [0], [1], [0, 0, 1, 1], [], []>} : vector<32x64xf32>, vector<64x16xf32>, vector<32x16xf32> -> vector<32x16xf32>
    %30 = vector.broadcast %4 : vector<32x1xf32> to vector<32x16xf32>
    %31 = arith.mulf %29, %30 : vector<32x16xf32>
    %32 = arith.addf %31, %23 : vector<32x16xf32>
    %33 = vector.broadcast %7 : vector<1x16xf32> to vector<32x16xf32>
    %34 = arith.addf %32, %33 : vector<32x16xf32>
    %cst_39 = arith.constant 0.000000e+00 : f32
    %35 = vector.broadcast %cst_39 : f32 to vector<32x16xf32>
    %36 = arith.cmpf ogt, %34, %35 : vector<32x16xf32>
    %cst_40 = arith.constant 0.000000e+00 : f32
    %37 = vector.broadcast %cst_40 : f32 to vector<32x16xf32>
    %38 = arith.minimumf %34, %37 : vector<32x16xf32>
    %39 = math.exp %38 : vector<32x16xf32>
    %cst_41 = arith.constant 1.000000e+00 : f32
    %40 = vector.broadcast %cst_41 : f32 to vector<32x16xf32>
    %41 = arith.subf %39, %40 : vector<32x16xf32>
    %42 = arith.select %36, %34, %41 : vector<32x16xi1>, vector<32x16xf32>
    %43 = arith.truncf %42 : vector<32x16xf32> to vector<32x16xbf16>
    %cst_42 = arith.constant dense<0.000000e+00> : vector<32x4xf32>
    %44 = tpu.matmul %43, %8, %cst_42 {dimension_numbers = #tpu.dot_dimension_numbers<[1], [0], [0], [1], [0, 0, 1, 1], [], []>} : vector<32x16xbf16>, vector<16x4xbf16>, vector<32x4xf32> -> vector<32x4xf32>
    %cst_43 = arith.constant dense<0.000000e+00> : vector<32x128xf32>
    %45 = tpu.matmul %43, %9, %cst_43 {dimension_numbers = #tpu.dot_dimension_numbers<[1], [0], [0], [1], [0, 0, 1, 1], [], []>} : vector<32x16xbf16>, vector<16x128xbf16>, vector<32x128xf32> -> vector<32x128xf32>
    %46 = arith.truncf %44 : vector<32x4xf32> to vector<32x4xbf16>
    %cst_44 = arith.constant dense<0.000000e+00> : vector<224x4xf32>
    %47 = tpu.matmul %2, %46, %cst_44 {dimension_numbers = #tpu.dot_dimension_numbers<[1], [0], [0], [1], [0, 0, 1, 1], [], []>} : vector<224x32xbf16>, vector<32x4xbf16>, vector<224x4xf32> -> vector<224x4xf32>
    %cst_45 = arith.constant dense<0.000000e+00> : vector<224x4xf32>
    %48 = tpu.matmul %20, %15, %cst_45 {dimension_numbers = #tpu.dot_dimension_numbers<[1], [0], [0], [1], [0, 0, 1, 1], [], []>} : vector<224x8xf32>, vector<8x4xf32>, vector<224x4xf32> -> vector<224x4xf32>
    %49 = arith.mulf %47, %48 : vector<224x4xf32>
    %cst_46 = arith.constant dense<0.000000e+00> : vector<32x4xf32>
    %50 = tpu.matmul %21, %49, %cst_46 {dimension_numbers = #tpu.dot_dimension_numbers<[1], [0], [0], [1], [0, 0, 1, 1], [], []>} : vector<32x224xf32>, vector<224x4xf32>, vector<32x4xf32> -> vector<32x4xf32>
    %cst_47 = arith.constant dense<0.000000e+00> : vector<32x128xf32>
    %51 = tpu.matmul %50, %16, %cst_47 {dimension_numbers = #tpu.dot_dimension_numbers<[1], [0], [0], [1], [0, 0, 1, 1], [], []>} : vector<32x4xf32>, vector<4x128xf32>, vector<32x128xf32> -> vector<32x128xf32>
    %52 = vector.broadcast %4 : vector<32x1xf32> to vector<32x128xf32>
    %53 = arith.mulf %51, %52 : vector<32x128xf32>
    %54 = arith.addf %53, %45 : vector<32x128xf32>
    %55 = vector.broadcast %10 : vector<1x128xf32> to vector<32x128xf32>
    %56 = arith.addf %54, %55 : vector<32x128xf32>
    %c0_48 = arith.constant 0 : index
    %c0_49 = arith.constant 0 : index
    %57 = vector.load %arg17[%c0_48, %c0_49] : memref<32x128xf32, #tpu.memory_space<vmem>>, vector<32x128xf32>
    tpu.vector_store %arg17[%c0_48, %c0_49], %56 {strides = array<i32>} : memref<32x128xf32, #tpu.memory_space<vmem>>, vector<32x128xf32>,
    return
  }
}

</mosaic_0001>

<bundles_post_ra>
// kernel: tpu_custom_call.1
= control target key start
LH: loop header
LB: loop body
LE: loop exit
PB: predicated region body
PF: predicated region fallthrough
CT: control target
= control target key end

     0   :  { %s4482_s0 = inlined_call_operand.hbm [shape: bf16[32,2], index: 0, kind: input, shape index: {}]   ;;  %s4483_s1 = inlined_call_operand.hbm [shape: f32[224,4], index: 1, kind: input, shape index: {}]   ;;  %s4484_s2 = inlined_call_operand.hbm [shape: bf16[224,32], index: 2, kind: input, shape index: {}]   ;;  %s4485_s3 = inlined_call_operand.hbm [shape: bf16[32,224], index: 3, kind: input, shape index: {}]   ;;  %s4486_s4 = inlined_call_operand.hbm [shape: f32[32,1], index: 4, kind: input, shape index: {}]   ;;  %s4487_s5 = inlined_call_operand.hbm [shape: bf16[2,64], index: 5, kind: input, shape index: {}]   ;;  %s4488_s6 = inlined_call_operand.hbm [shape: bf16[2,16], index: 6, kind: input, shape index: {}]   ;;  %s4489_s7 = inlined_call_operand.hbm [shape: f32[1,16], index: 7, kind: input, shape index: {}]   ;;  %s4490_s8 = inlined_call_operand.hbm [shape: bf16[16,4], index: 8, kind: input, shape index: {}]   ;;  %s4491_s9 = inlined_call_operand.hbm [shape: bf16[16,128], index: 9, kind: input, shape index: {}]   ;;  %s4492_s10 = inlined_call_operand.hbm [shape: f32[1,128], index: 10, kind: input, shape index: {}]   ;;  %s4493_s11 = inlined_call_operand.hbm [shape: f32[4,8], index: 11, kind: input, shape index: {}]   ;;  %s4494_s12 = inlined_call_operand.hbm [shape: f32[1,8], index: 12, kind: input, shape index: {}]   ;;  %s4495_s13 = inlined_call_operand.hbm [shape: f32[8,64], index: 13, kind: input, shape index: {}]   ;;  %s4496_s14 = inlined_call_operand.hbm [shape: f32[64,16], index: 14, kind: input, shape index: {}]   ;;  %s4497_s15 = inlined_call_operand.hbm [shape: f32[8,4], index: 15, kind: input, shape index: {}]   ;;  %s4498_s16 = inlined_call_operand.hbm [shape: f32[4,128], index: 16, kind: input, shape index: {}]   ;;  %s4499_s17 = inlined_call_operand.hbm [shape: f32[32,128], index: 17, kind: output, shape index: {}]  }
   0x1   :  { %4525 = sst [smem:[#allocation49_spill]] %s4482_s0 }
   0x2   :  { %4526 = sst [smem:[#allocation50_spill]] %s4483_s1 }
   0x3   :  { %4527 = sst [smem:[#allocation51_spill]] %s4498_s16 }
   0x4   :  { %4528 = sst [smem:[#allocation52_spill]] %s4499_s17 }
   0x5   :  { %22 = vsyncpa [#allocation3], 0 }
   0x6   :  { %23 = vsyncpa [#allocation6], 0 }
   0x7   :  { %24 = vsyncpa [#allocation9], 0 }
   0x8   :  { %25 = vsyncpa [#allocation12], 0 }
   0x9   :  { %26 = vsyncpa [#allocation15], 0 }
   0xa   :  { %27 = vsyncpa [#allocation18], 0 }
   0xb   :  { %28 = vsyncpa [#allocation21], 0 }
   0xc   :  { %29 = vsyncpa [#allocation24], 0 }
   0xd   :  { %30 = vsyncpa [#allocation27], 0 }
   0xe   :  { %31 = vsyncpa [#allocation4], 0  ;;  %s3601_s24 = smov [#allocation5]   ;;  %s4529_s28 = sld [smem:[#allocation50_spill]] }
   0xf   :  { %s49_s25 = sshll.u32 %s3601_s24, 4  ;;  %s50_s25 = int_to_ptr.vmem [resolvable:$true] %s49_s25 }
  0x14   :  { %s3185_s29 = scalar_lea.hbm %s4529_s28, 3584 }
  0x15   :  { %p3186_p0 = scmp.ne.s32.totalorder %s4529_s28, %s3185_s29  ;;  %p3189_p1 = scmp.lt.u32.totalorder %s3185_s29, %s4529_s28 }
  0x17   :  { %p3191_p2 = pnand %p3189_p1, %p3186_p0 }
  0x19   :  { %3194 = shalt.err (!%p3191_p2)
}
  0x1a   :  { %s3195_s1 = scalar_lea.vmem %s50_s25, 3584  ;;  %p3200_p4 = scmp.lt.s32.totalorder %s50_s25, %s50_s25 }
  0x1b   :  { %p3196_p3 = scmp.ne.s32.totalorder %s50_s25, %s3195_s1  ;;  %p3201_p5 = scmp.lt.s32.totalorder %s3195_s1, %s3195_s1 }
  0x1d   :  { %p3202_p6 = por %p3201_p5, %p3200_p4 }
  0x1f   :  { %p3203_p7 = pnand %p3202_p6, %p3196_p3 }
  0x21   :  { %3206 = shalt.err (!%p3203_p7)
}
  0x22   :  { %s3602_s20 = smov 128   ;;  %s3603_s21 = smov 8  }
  0x23   :  { %55 = dma.hbm_to_vmem [thread:$0]  %s4529_s28, 3584, %s50_s25, [#allocation6], %s3602_s20, %s3602_s20, %s3603_s21  }
  0x24   :  { %s3604_s24 = smov [#allocation8]   ;;  %s3605_s27 = smov [#allocation11]  }
  0x25   :  { %s73_s26 = sshll.u32 %s3604_s24, 4  ;;  %s98_s29 = sshll.u32 %s3605_s27, 4  ;;  %s74_s26 = int_to_ptr.vmem [resolvable:$true] %s73_s26  ;;  %s99_s29 = int_to_ptr.vmem [resolvable:$true] %s98_s29 }
  0x26   :  { %s3207_s18 = scalar_lea.hbm %s4485_s3, 512 }
  0x27   :  { %p3208_p8 = scmp.ne.s32.totalorder %s4485_s3, %s3207_s18  ;;  %p3211_p9 = scmp.lt.u32.totalorder %s3207_s18, %s4485_s3 }
  0x29   :  { %p3213_p10 = pnand %p3211_p9, %p3208_p8 }
  0x2b   :  { %3216 = shalt.err (!%p3213_p10)
}
  0x2c   :  { %s3217_s25 = scalar_lea.vmem %s74_s26, 512  ;;  %p3222_p12 = scmp.lt.s32.totalorder %s74_s26, %s74_s26 }
  0x2d   :  { %p3218_p11 = scmp.ne.s32.totalorder %s74_s26, %s3217_s25  ;;  %p3223_p13 = scmp.lt.s32.totalorder %s3217_s25, %s3217_s25 }
  0x2f   :  { %p3224_p0 = por %p3223_p13, %p3222_p12 }
  0x31   :  { %p3225_p1 = pnand %p3224_p0, %p3218_p11 }
  0x33   :  { %3228 = shalt.err (!%p3225_p1)
}
  0x34   :  { %79 = dma.hbm_to_vmem [thread:$0]  %s4485_s3, 512, %s74_s26, [#allocation9], %s3602_s20, %s3602_s20, %s3603_s21  }
  0x35   :  { %s3229_s17 = scalar_lea.hbm %s4487_s5, 16 }
  0x36   :  { %p3230_p2 = scmp.ne.s32.totalorder %s4487_s5, %s3229_s17  ;;  %p3233_p3 = scmp.lt.u32.totalorder %s3229_s17, %s4487_s5 }
  0x38   :  { %p3235_p4 = pnand %p3233_p3, %p3230_p2 }
  0x3a   :  { %3238 = shalt.err (!%p3235_p4)
}
  0x3b   :  { %s3239_s18 = scalar_lea.vmem %s99_s29, 16  ;;  %s3243_s19 = scalar_lea.vmem %s99_s29, 32 }
  0x3c   :  { %p3240_p5 = scmp.ne.s32.totalorder %s99_s29, %s3239_s18  ;;  %p3244_p6 = scmp.lt.s32.totalorder %s99_s29, %s99_s29 }
  0x3d   :  { %p3245_p7 = scmp.lt.s32.totalorder %s3243_s19, %s3239_s18 }
  0x3f   :  { %p3246_p8 = por %p3245_p7, %p3244_p6 }
  0x41   :  { %p3247_p9 = pnand %p3246_p8, %p3240_p5 }
  0x43   :  { %3250 = shalt.err (!%p3247_p9)
}
  0x44   :  { %101 = dma.hbm_to_vmem [thread:$0]  %s4487_s5, 16, %s99_s29, [#allocation12]  }
  0x45   :  { %s3606_s1 = smov [#allocation14]   ;;  %s3251_s23 = scalar_lea.hbm %s4489_s7, 16 }
  0x46   :  { %s118_s25 = sshll.u32 %s3606_s1, 4  ;;  %p3252_p10 = scmp.ne.s32.totalorder %s4489_s7, %s3251_s23  ;;  %s119_s25 = int_to_ptr.vmem [resolvable:$true] %s118_s25 }
  0x47   :  { %p3255_p11 = scmp.lt.u32.totalorder %s3251_s23, %s4489_s7 }
  0x49   :  { %p3257_p12 = pnand %p3255_p11, %p3252_p10 }
  0x4b   :  { %3260 = shalt.err (!%p3257_p12)
}
  0x4c   :  { %s3261_s0 = scalar_lea.vmem %s119_s25, 16  ;;  %s3265_s5 = scalar_lea.vmem %s119_s25, 32 }
  0x4d   :  { %p3262_p13 = scmp.ne.s32.totalorder %s119_s25, %s3261_s0  ;;  %p3266_p0 = scmp.lt.s32.totalorder %s119_s25, %s119_s25 }
  0x4e   :  { %p3267_p1 = scmp.lt.s32.totalorder %s3265_s5, %s3261_s0 }
  0x50   :  { %p3268_p2 = por %p3267_p1, %p3266_p0 }
  0x52   :  { %p3269_p3 = pnand %p3268_p2, %p3262_p13 }
  0x54   :  { %3272 = shalt.err (!%p3269_p3)
}
  0x55   :  { %121 = dma.hbm_to_vmem [thread:$0]  %s4489_s7, 16, %s119_s25, [#allocation15]  }
  0x56   :  { %s3607_s18 = smov [#allocation17]   ;;  %s3608_s3 = smov [#allocation20]  }
  0x57   :  { %s139_s19 = sshll.u32 %s3607_s18, 4  ;;  %s162_s26 = sshll.u32 %s3608_s3, 4  ;;  %s140_s19 = int_to_ptr.vmem [resolvable:$true] %s139_s19  ;;  %s163_s26 = int_to_ptr.vmem [resolvable:$true] %s162_s26 }
  0x58   :  { %s3273_s22 = scalar_lea.hbm %s4491_s9, 128 }
  0x59   :  { %p3274_p4 = scmp.ne.s32.totalorder %s4491_s9, %s3273_s22  ;;  %p3277_p5 = scmp.lt.u32.totalorder %s3273_s22, %s4491_s9 }
  0x5b   :  { %p3279_p6 = pnand %p3277_p5, %p3274_p4 }
  0x5d   :  { %3282 = shalt.err (!%p3279_p6)
}
  0x5e   :  { %s3283_s7 = scalar_lea.vmem %s140_s19, 128  ;;  %p3288_p8 = scmp.lt.s32.totalorder %s140_s19, %s140_s19 }
  0x5f   :  { %p3284_p7 = scmp.ne.s32.totalorder %s140_s19, %s3283_s7  ;;  %p3289_p9 = scmp.lt.s32.totalorder %s3283_s7, %s3283_s7 }
  0x61   :  { %p3290_p10 = por %p3289_p9, %p3288_p8 }
  0x63   :  { %p3291_p11 = pnand %p3290_p10, %p3284_p7 }
  0x65   :  { %3294 = shalt.err (!%p3291_p11)
}
  0x66   :  { %s3609_s25 = smov 64   ;;  %s3610_s27 = smov 4  }
  0x67   :  { %145 = dma.hbm_to_vmem [thread:$0]  %s4491_s9, 128, %s140_s19, [#allocation18], %s3609_s25, %s3609_s25, %s3610_s27  }
  0x68   :  { %s3295_s18 = scalar_lea.hbm %s4493_s11, 64 }
  0x69   :  { %p3296_p12 = scmp.ne.s32.totalorder %s4493_s11, %s3295_s18  ;;  %p3299_p13 = scmp.lt.u32.totalorder %s3295_s18, %s4493_s11 }
  0x6b   :  { %p3301_p0 = pnand %p3299_p13, %p3296_p12 }
  0x6d   :  { %3304 = shalt.err (!%p3301_p0)
}
  0x6e   :  { %s3305_s23 = scalar_lea.vmem %s163_s26, 64  ;;  %p3310_p2 = scmp.lt.s32.totalorder %s163_s26, %s163_s26 }
  0x6f   :  { %p3306_p1 = scmp.ne.s32.totalorder %s163_s26, %s3305_s23  ;;  %p3311_p3 = scmp.lt.s32.totalorder %s3305_s23, %s3305_s23 }
  0x71   :  { %p3312_p4 = por %p3311_p3, %p3310_p2 }
  0x73   :  { %p3313_p5 = pnand %p3312_p4, %p3306_p1 }
  0x75   :  { %3316 = shalt.err (!%p3313_p5)
}
  0x76   :  { %165 = dma.hbm_to_vmem [thread:$0]  %s4493_s11, 64, %s163_s26, [#allocation21]  }
  0x77   :  { %s3611_s16 = smov [#allocation23]   ;;  %s3612_s24 = smov [#allocation26]  }
  0x78   :  { %s182_s17 = sshll.u32 %s3611_s16, 4  ;;  %s204_s7 = sshll.u32 %s3612_s24, 4  ;;  %s183_s17 = int_to_ptr.vmem [resolvable:$true] %s182_s17  ;;  %s205_s7 = int_to_ptr.vmem [resolvable:$true] %s204_s7 }
  0x79   :  { %s3317_s29 = scalar_lea.hbm %s4495_s13, 128 }
  0x7a   :  { %p3318_p6 = scmp.ne.s32.totalorder %s4495_s13, %s3317_s29  ;;  %p3321_p7 = scmp.lt.u32.totalorder %s3317_s29, %s4495_s13 }
  0x7c   :  { %p3323_p8 = pnand %p3321_p7, %p3318_p6 }
  0x7e   :  { %3326 = shalt.err (!%p3323_p8)
}
  0x7f   :  { %s3327_s11 = scalar_lea.vmem %s183_s17, 128  ;;  %p3332_p10 = scmp.lt.s32.totalorder %s183_s17, %s183_s17 }
  0x80   :  { %p3328_p9 = scmp.ne.s32.totalorder %s183_s17, %s3327_s11  ;;  %p3333_p11 = scmp.lt.s32.totalorder %s3327_s11, %s3327_s11 }
  0x82   :  { %p3334_p12 = por %p3333_p11, %p3332_p10 }
  0x84   :  { %p3335_p13 = pnand %p3334_p12, %p3328_p9 }
  0x86   :  { %3338 = shalt.err (!%p3335_p13)
}
  0x87   :  { %185 = dma.hbm_to_vmem [thread:$0]  %s4495_s13, 128, %s183_s17, [#allocation24]  }
  0x88   :  { %s3339_s9 = scalar_lea.hbm %s4497_s15, 128 }
  0x89   :  { %p3340_p0 = scmp.ne.s32.totalorder %s4497_s15, %s3339_s9  ;;  %p3343_p1 = scmp.lt.u32.totalorder %s3339_s9, %s4497_s15 }
  0x8b   :  { %p3345_p2 = pnand %p3343_p1, %p3340_p0 }
  0x8d   :  { %3348 = shalt.err (!%p3345_p2)
}
  0x8e   :  { %s3349_s5 = scalar_lea.vmem %s205_s7, 128  ;;  %p3354_p4 = scmp.lt.s32.totalorder %s205_s7, %s205_s7 }
  0x8f   :  { %p3350_p3 = scmp.ne.s32.totalorder %s205_s7, %s3349_s5  ;;  %p3355_p5 = scmp.lt.s32.totalorder %s3349_s5, %s3349_s5 }
  0x91   :  { %p3356_p6 = por %p3355_p5, %p3354_p4 }
  0x93   :  { %p3357_p7 = pnand %p3356_p6, %p3350_p3 }
  0x95   :  { %3360 = shalt.err (!%p3357_p7)
}
  0x96   :  { %207 = dma.hbm_to_vmem [thread:$0]  %s4497_s15, 128, %s205_s7, [#allocation27]  }
  0x97   :  { %s3613_s29 = smov [#allocation2]   ;;  %s3614_s18 = smov [#allocation7]  }
  0x98   :  { %s37_s30 = sshll.u32 %s3613_s29, 4  ;;  %s61_s3 = sshll.u32 %s3614_s18, 4  ;;  %s38_s30 = int_to_ptr.vmem [resolvable:$true] %s37_s30  ;;  %s3820_s3 = int_to_ptr.vmem [resolvable:$true] %s61_s3 }
  0x99   :  { %s4530_s26 = sld [smem:[#allocation49_spill]] }
  0x9f   :  { %s3361_s28 = scalar_lea.hbm %s4530_s26, 256 }
  0xa0   :  { %p3362_p8 = scmp.ne.s32.totalorder %s4530_s26, %s3361_s28  ;;  %p3365_p9 = scmp.lt.u32.totalorder %s3361_s28, %s4530_s26 }
  0xa2   :  { %p3367_p10 = pnand %p3365_p9, %p3362_p8 }
  0xa4   :  { %3370 = shalt.err (!%p3367_p10)
}
  0xa5   :  { %s3371_s15 = scalar_lea.vmem %s38_s30, 256  ;;  %p3376_p12 = scmp.lt.s32.totalorder %s38_s30, %s38_s30 }
  0xa6   :  { %p3372_p11 = scmp.ne.s32.totalorder %s38_s30, %s3371_s15  ;;  %p3377_p13 = scmp.lt.s32.totalorder %s3371_s15, %s3371_s15 }
  0xa8   :  { %p3378_p0 = por %p3377_p13, %p3376_p12 }
  0xaa   :  { %p3379_p1 = pnand %p3378_p0, %p3372_p11 }
  0xac   :  { %3382 = shalt.err (!%p3379_p1)
}
  0xad   :  { %43 = dma.hbm_to_vmem [thread:$0]  %s4530_s26, 256, %s38_s30, [#allocation3], %s3609_s25, %s3609_s25, %s3610_s27  }
  0xae   :  { %s3383_s5 = scalar_lea.hbm %s4484_s2, 1792 }
  0xaf   :  { %p3384_p2 = scmp.ne.s32.totalorder %s4484_s2, %s3383_s5  ;;  %p3387_p3 = scmp.lt.u32.totalorder %s3383_s5, %s4484_s2 }
  0xb1   :  { %p3389_p4 = pnand %p3387_p3, %p3384_p2 }
  0xb3   :  { %3392 = shalt.err (!%p3389_p4)
}
  0xb4   :  { %s3393_s1 = scalar_lea.vmem %s3820_s3, 1792  ;;  %p3398_p6 = scmp.lt.s32.totalorder %s3820_s3, %s3820_s3 }
  0xb5   :  { %p3394_p5 = scmp.ne.s32.totalorder %s3820_s3, %s3393_s1  ;;  %p3399_p7 = scmp.lt.s32.totalorder %s3393_s1, %s3393_s1 }
  0xb7   :  { %p3400_p8 = por %p3399_p7, %p3398_p6 }
  0xb9   :  { %p3401_p9 = pnand %p3400_p8, %p3394_p5 }
  0xbb   :  { %3404 = shalt.err (!%p3401_p9)
}
  0xbc   :  { %67 = dma.hbm_to_vmem [thread:$0]  %s4484_s2, 1792, %s3820_s3, [#allocation6], %s3609_s25, %s3609_s25, %s3610_s27  }
  0xbd   :  { %s3615_s26 = smov [#allocation10]   ;;  %s3616_s22 = smov [#allocation13]  }
  0xbe   :  { %s85_s28 = sshll.u32 %s3615_s26, 4  ;;  %s108_s23 = sshll.u32 %s3616_s22, 4  ;;  %s86_s28 = int_to_ptr.vmem [resolvable:$true] %s85_s28  ;;  %s109_s23 = int_to_ptr.vmem [resolvable:$true] %s108_s23 }
  0xbf   :  { %s3405_s15 = scalar_lea.hbm %s4486_s4, 512 }
  0xc0   :  { %p3406_p10 = scmp.ne.s32.totalorder %s4486_s4, %s3405_s15  ;;  %p3409_p11 = scmp.lt.u32.totalorder %s3405_s15, %s4486_s4 }
  0xc2   :  { %p3411_p12 = pnand %p3409_p11, %p3406_p10 }
  0xc4   :  { %3414 = shalt.err (!%p3411_p12)
}
  0xc5   :  { %s3415_s2 = scalar_lea.vmem %s86_s28, 512  ;;  %p3420_p0 = scmp.lt.s32.totalorder %s86_s28, %s86_s28 }
  0xc6   :  { %p3416_p13 = scmp.ne.s32.totalorder %s86_s28, %s3415_s2  ;;  %p3421_p1 = scmp.lt.s32.totalorder %s3415_s2, %s3415_s2 }
  0xc8   :  { %p3422_p2 = por %p3421_p1, %p3420_p0 }
  0xca   :  { %p3423_p3 = pnand %p3422_p2, %p3416_p13 }
  0xcc   :  { %3426 = shalt.err (!%p3423_p3)
}
  0xcd   :  { %91 = dma.hbm_to_vmem [thread:$0]  %s4486_s4, 512, %s86_s28, [#allocation9], %s3602_s20, %s3602_s20, %s3603_s21  }
  0xce   :  { %s3427_s29 = scalar_lea.hbm %s4488_s6, 16 }
  0xcf   :  { %p3428_p4 = scmp.ne.s32.totalorder %s4488_s6, %s3427_s29  ;;  %p3431_p5 = scmp.lt.u32.totalorder %s3427_s29, %s4488_s6 }
  0xd1   :  { %p3433_p6 = pnand %p3431_p5, %p3428_p4 }
  0xd3   :  { %3436 = shalt.err (!%p3433_p6)
}
  0xd4   :  { %s3437_s26 = scalar_lea.vmem %s109_s23, 16  ;;  %s3441_s22 = scalar_lea.vmem %s109_s23, 32 }
  0xd5   :  { %p3438_p7 = scmp.ne.s32.totalorder %s109_s23, %s3437_s26  ;;  %p3442_p8 = scmp.lt.s32.totalorder %s109_s23, %s109_s23 }
  0xd6   :  { %p3443_p9 = scmp.lt.s32.totalorder %s3441_s22, %s3437_s26 }
  0xd8   :  { %p3444_p10 = por %p3443_p9, %p3442_p8 }
  0xda   :  { %p3445_p11 = pnand %p3444_p10, %p3438_p7 }
  0xdc   :  { %3448 = shalt.err (!%p3445_p11)
}
  0xdd   :  { %111 = dma.hbm_to_vmem [thread:$0]  %s4488_s6, 16, %s109_s23, [#allocation12]  }
  0xde   :  { %s3617_s9 = smov [#allocation16]   ;;  %s3618_s15 = smov [#allocation19]  }
  0xdf   :  { %s127_s19 = sshll.u32 %s3617_s9, 4  ;;  %s152_s7 = sshll.u32 %s3618_s15, 4  ;;  %s128_s19 = int_to_ptr.vmem [resolvable:$true] %s127_s19  ;;  %s153_s7 = int_to_ptr.vmem [resolvable:$true] %s152_s7 }
  0xe0   :  { %s3449_s0 = scalar_lea.hbm %s4490_s8, 128 }
  0xe1   :  { %p3450_p12 = scmp.ne.s32.totalorder %s4490_s8, %s3449_s0  ;;  %p3453_p13 = scmp.lt.u32.totalorder %s3449_s0, %s4490_s8 }
  0xe3   :  { %p3455_p0 = pnand %p3453_p13, %p3450_p12 }
  0xe5   :  { %3458 = shalt.err (!%p3455_p0)
}
  0xe6   :  { %s3459_s6 = scalar_lea.vmem %s128_s19, 128  ;;  %p3464_p2 = scmp.lt.s32.totalorder %s128_s19, %s128_s19 }
  0xe7   :  { %p3460_p1 = scmp.ne.s32.totalorder %s128_s19, %s3459_s6  ;;  %p3465_p3 = scmp.lt.s32.totalorder %s3459_s6, %s3459_s6 }
  0xe9   :  { %p3466_p4 = por %p3465_p3, %p3464_p2 }
  0xeb   :  { %p3467_p5 = pnand %p3466_p4, %p3460_p1 }
  0xed   :  { %3470 = shalt.err (!%p3467_p5)
}
  0xee   :  { %133 = dma.hbm_to_vmem [thread:$0]  %s4490_s8, 128, %s128_s19, [#allocation15], %s3609_s25, %s3609_s25, %s3610_s27  }
  0xef   :  { %s3471_s1 = scalar_lea.hbm %s4492_s10, 16 }
  0xf0   :  { %p3472_p6 = scmp.ne.s32.totalorder %s4492_s10, %s3471_s1  ;;  %p3475_p7 = scmp.lt.u32.totalorder %s3471_s1, %s4492_s10 }
  0xf2   :  { %p3477_p8 = pnand %p3475_p7, %p3472_p6 }
  0xf4   :  { %3480 = shalt.err (!%p3477_p8)
}
  0xf5   :  { %s3481_s4 = scalar_lea.vmem %s153_s7, 16  ;;  %s3485_s28 = scalar_lea.vmem %s153_s7, 32 }
  0xf6   :  { %p3482_p9 = scmp.ne.s32.totalorder %s153_s7, %s3481_s4  ;;  %p3486_p10 = scmp.lt.s32.totalorder %s153_s7, %s153_s7 }
  0xf7   :  { %p3487_p11 = scmp.lt.s32.totalorder %s3485_s28, %s3481_s4 }
  0xf9   :  { %p3488_p12 = por %p3487_p11, %p3486_p10 }
  0xfb   :  { %p3489_p13 = pnand %p3488_p12, %p3482_p9 }
  0xfd   :  { %3492 = shalt.err (!%p3489_p13)
}
  0xfe   :  { %155 = dma.hbm_to_vmem [thread:$0]  %s4492_s10, 16, %s153_s7, [#allocation18]  }
  0xff   :  { %s3619_s27 = smov [#allocation22]   ;;  %s3620_s19 = smov [#allocation25]  }
 0x100   :  { %s172_s9 = sshll.u32 %s3619_s27, 4  ;;  %s191_s15 = sshll.u32 %s3620_s19, 4  ;;  %s173_s9 = int_to_ptr.vmem [resolvable:$true] %s172_s9  ;;  %s3911_s15 = int_to_ptr.vmem [resolvable:$true] %s191_s15 }
 0x101   :  { %s3493_s0 = scalar_lea.hbm %s4494_s12, 16 }
 0x102   :  { %p3494_p0 = scmp.ne.s32.totalorder %s4494_s12, %s3493_s0  ;;  %p3497_p1 = scmp.lt.u32.totalorder %s3493_s0, %s4494_s12 }
 0x104   :  { %p3499_p2 = pnand %p3497_p1, %p3494_p0 }
 0x106   :  { %3502 = shalt.err (!%p3499_p2)
}
 0x107   :  { %s3503_s10 = scalar_lea.vmem %s173_s9, 16  ;;  %s3507_s7 = scalar_lea.vmem %s173_s9, 32 }
 0x108   :  { %p3504_p3 = scmp.ne.s32.totalorder %s173_s9, %s3503_s10  ;;  %p3508_p4 = scmp.lt.s32.totalorder %s173_s9, %s173_s9 }
 0x109   :  { %p3509_p5 = scmp.lt.s32.totalorder %s3507_s7, %s3503_s10 }
 0x10b   :  { %p3510_p6 = por %p3509_p5, %p3508_p4 }
 0x10d   :  { %p3511_p7 = pnand %p3510_p6, %p3504_p3 }
 0x10f   :  { %3514 = shalt.err (!%p3511_p7)
}
 0x110   :  { %175 = dma.hbm_to_vmem [thread:$0]  %s4494_s12, 16, %s173_s9, [#allocation21]  }
 0x111   :  { %s3515_s18 = scalar_lea.hbm %s4496_s14, 1024 }
 0x112   :  { %p3516_p8 = scmp.ne.s32.totalorder %s4496_s14, %s3515_s18  ;;  %p3519_p9 = scmp.lt.u32.totalorder %s3515_s18, %s4496_s14 }
 0x114   :  { %p3521_p10 = pnand %p3519_p9, %p3516_p8 }
 0x116   :  { %3524 = shalt.err (!%p3521_p10)
}
 0x117   :  { %s3525_s22 = scalar_lea.vmem %s3911_s15, 1024  ;;  %p3530_p12 = scmp.lt.s32.totalorder %s3911_s15, %s3911_s15 }
 0x118   :  { %p3526_p11 = scmp.ne.s32.totalorder %s3911_s15, %s3525_s22  ;;  %p3531_p13 = scmp.lt.s32.totalorder %s3525_s22, %s3525_s22 }
 0x11a   :  { %p3532_p0 = por %p3531_p13, %p3530_p12 }
 0x11c   :  { %p3533_p1 = pnand %p3532_p0, %p3526_p11 }
 0x11e   :  { %3536 = shalt.err (!%p3533_p1)
}
 0x11f   :  { %197 = dma.hbm_to_vmem [thread:$0]  %s4496_s14, 1024, %s3911_s15, [#allocation24], %s3602_s20, %s3602_s20, %s3603_s21  }
 0x120   :  { %s3621_s28 = smov [#allocation28]   ;;  %s4531_s9 = sld [smem:[#allocation51_spill]] }
 0x121   :  { %s214_s8 = sshll.u32 %s3621_s28, 4  ;;  %s215_s8 = int_to_ptr.vmem [resolvable:$true] %s214_s8 }
 0x126   :  { %s3537_s19 = scalar_lea.hbm %s4531_s9, 64 }
 0x127   :  { %p3538_p2 = scmp.ne.s32.totalorder %s4531_s9, %s3537_s19  ;;  %p3541_p3 = scmp.lt.u32.totalorder %s3537_s19, %s4531_s9 }
 0x129   :  { %p3543_p4 = pnand %p3541_p3, %p3538_p2 }
 0x12b   :  { %3546 = shalt.err (!%p3543_p4)
}
 0x12c   :  { %s3547_s3 = scalar_lea.vmem %s215_s8, 64  ;;  %p3552_p6 = scmp.lt.s32.totalorder %s215_s8, %s215_s8 }
 0x12d   :  { %p3548_p5 = scmp.ne.s32.totalorder %s215_s8, %s3547_s3  ;;  %p3553_p7 = scmp.lt.s32.totalorder %s3547_s3, %s3547_s3 }
 0x12f   :  { %p3554_p8 = por %p3553_p7, %p3552_p6 }
 0x131   :  { %p3555_p9 = pnand %p3554_p8, %p3548_p5 }
 0x133   :  { %3558 = shalt.err (!%p3555_p9)
}
 0x134   :  { %217 = dma.hbm_to_vmem [thread:$0]  %s4531_s9, 64, %s215_s8, [#allocation27]  }
 0x135   :  { %3581 = dma.done.wait [#allocation3], 256  }
 0x136   :  { %3582 = vsyncadd [#allocation3], 4294967040 }
 0x137   :  { %3583 = dma.done.wait [#allocation6], 5376  }
 0x138   :  { %3584 = vsyncadd [#allocation6], 4294961920 }
 0x139   :  { %3585 = dma.done.wait [#allocation9], 1024  }
 0x13a   :  { %3586 = vsyncadd [#allocation9], 4294966272 }
 0x13b   :  { %3587 = dma.done.wait [#allocation12], 32  }
 0x13c   :  { %3588 = vsyncadd [#allocation12], 4294967264 }
 0x13d   :  { %3589 = dma.done.wait [#allocation15], 144  }
 0x13e   :  { %3590 = vsyncadd [#allocation15], 4294967152 }
 0x13f   :  { %3591 = dma.done.wait [#allocation18], 144  }
 0x140   :  { %3592 = vsyncadd [#allocation18], 4294967152 }
 0x141   :  { %3593 = dma.done.wait [#allocation21], 80  }
 0x142   :  { %3594 = vsyncadd [#allocation21], 4294967216 }
 0x143   :  { %3595 = dma.done.wait [#allocation24], 1152  }
 0x144   :  { %3596 = vsyncadd [#allocation24], 4294966144 }
 0x145   :  { %3597 = dma.done.wait [#allocation27], 192  }
 0x146   :  { %3598 = vsyncadd [#allocation27], 4294967104  ;;  %vm450_vm0 = vcmask 1043456   ;;  %v346_v0 = vld [vmem:[#allocation20] sm:$0xf]  ;;  %v274_v1 = vld [vmem:[#allocation5] sm:$0xff] }
 0x147   :  { %vm365_vm1 = vcmask 31744   ;;  %v300_v2 = vld [vmem:[#allocation5 + $0xd0] sm:$0xff]  ;;  %vm740_vm2 = vcmask 1040384   ;;  %2723 = vmatprep.subr.msk.mxu0 %vm450_vm0, %v346_v0  ;;  %3073 = vmatprep.subr.msk.mxu1 %vm450_vm0, %v346_v0  ;;  %v275_v3 = vld [vmem:[#allocation5 + $0x8] sm:$0xff]  ;;  %v301_v4 = vld [vmem:[#allocation5 + $0xd8] sm:$0xff]  ;;  %vm733_vm3 = vcmask 15360  }
 0x148   :  { %v338_v5 = vld [vmem:[#allocation11] sm:$0x1]  ;;  %2724 = vmatpush3.msk.msra.mxu0 %vm450_vm0, %v346_v0  ;;  %3074 = vmatpush3.msk.msra.mxu1 %vm450_vm0, %v346_v0  ;;  %v277_v9 = vld [vmem:[#allocation5 + $0x18] sm:$0xff]  ;;  %v278_v11 = vld [vmem:[#allocation5 + $0x20] sm:$0xff]  ;;  %vm917_vm4 = vcmask 261120   ;;  %vm1105_vm5 = vcmask 64512  }
 0x149   :  { %v276_v6 = vld [vmem:[#allocation5 + $0x10] sm:$0xff]  ;;  %2725 = vmatprep.mubr.msk.f32.mxu0 %vm365_vm1, %v274_v1  ;;  %2764 = vmatprep.mubr.msk.f32.mxu1 %vm365_vm1, %v300_v2  ;;  %v742_v7 = vsel %vm740_vm2, %v338_v5, 0  ;;  %v3104_v10 = vld [vmem:[#allocation2 + $0x8] sm:$0xff]   ;;  %v279_v12 = vld [vmem:[#allocation5 + $0x28] sm:$0xff]  ;;  %vm1423_vm6 = vcmask 785408   ;;  %vm1521_vm7 = vcmask 523264  }
 0x14a   :  { %v3103_v8 = vld [vmem:[#allocation2] sm:$0xff]   ;;  %2726 = vmatmul.mubr.msk.f32.vlgmr.msra.gmra.mrb[0].mxu0 %vm365_vm1, %v275_v3  ;;  %2765 = vmatmul.mubr.msk.f32.vlgmr.msra.gmra.mrb[0].mxu1 %vm365_vm1, %v301_v4  ;;  %v281_v14 = vld [vmem:[#allocation5 + $0x38] sm:$0xff]  ;;  %v282_v15 = vld [vmem:[#allocation5 + $0x40] sm:$0xff]  ;;  %vm1689_vm10 = vcmask 130048   ;;  %s3624_s5 = smov [#allocation29]  }
 0x14b   :  { %3075 = vmatprep.subr.msk.bf16.mxu1 %vm740_vm2, %v338_v5  ;;  %2728 = vmatprep.mubr.msk.f32.mxu0 %vm365_vm1, %v276_v6  ;;  %v280_v13 = vld [vmem:[#allocation5 + $0x30] sm:$0xff]  ;;  %v283_v16 = vld [vmem:[#allocation5 + $0x48] sm:$0xff]  ;;  %v285_v18 = vld [vmem:[#allocation5 + $0x58] sm:$0xff]  ;;  %s2392_s13 = sshll.u32 %s3624_s5, 4  ;;  %s2393_s13 = int_to_ptr.vmem [resolvable:$true] %s2392_s13 }
 0x14c   :  { %2768 = vmatpush3.bf16.msra.mxu1 %v742_v7  ;;  %2769 = vmatprep.mubr.msk.bf16.mxu1 %vm733_vm3, %v3103_v8  ;;  %v284_v17 = vld [vmem:[#allocation5 + $0x50] sm:$0xff]  ;;  %v286_v19 = vld [vmem:[#allocation5 + $0x60] sm:$0xff]  ;;  %v287_v20 = vld [vmem:[#allocation5 + $0x68] sm:$0xff]  ;;  %s3559_s10 = scalar_lea.vmem %s2393_s13, 512  ;;  %p3564_p11 = scmp.lt.s32.totalorder %s2393_s13, %s2393_s13 }
 0x14d   :  { %v288_v21 = vld [vmem:[#allocation5 + $0x70] sm:$0xff]  ;;  %v289_v22 = vld [vmem:[#allocation5 + $0x78] sm:$0xff]  ;;  %v290_v23 = vld [vmem:[#allocation5 + $0x80] sm:$0xff]  ;;  %p3560_p10 = scmp.ne.s32.totalorder %s2393_s13, %s3559_s10  ;;  %p3565_p12 = scmp.lt.s32.totalorder %s3559_s10, %s3559_s10 }
 0x14e   :  { %2729 = vmatmul.mubr.msk.f32.gmra.mrb[2].mxu0 %vm365_vm1, %v277_v9  ;;  %v291_v24 = vld [vmem:[#allocation5 + $0x88] sm:$0xff]  ;;  %v292_v25 = vld [vmem:[#allocation5 + $0x90] sm:$0xff]  ;;  %v293_v26 = vld [vmem:[#allocation5 + $0x98] sm:$0xff] }
 0x14f   :  { %2770 = vmatmul.mubr.msk.bf16.vlgmr.msra.gmra.mrb[4].mxu1 %vm733_vm3, %v3104_v10  ;;  %2731 = vmatprep.mubr.msk.f32.mxu0 %vm365_vm1, %v278_v11  ;;  %v294_v27 = vld [vmem:[#allocation5 + $0xa0] sm:$0xff]  ;;  %v295_v28 = vld [vmem:[#allocation5 + $0xa8] sm:$0xff]  ;;  %v296_v29 = vld [vmem:[#allocation5 + $0xb0] sm:$0xff]  ;;  %p3566_p13 = por %p3565_p12, %p3564_p11 }
 0x150   :  { %2775 = vmatprep.mubr.msk.bf16.mxu1 %vm733_vm3, %v3103_v8  ;;  %v297_v30 = vld [vmem:[#allocation5 + $0xb8] sm:$0xff]  ;;  %v298_v31 = vld [vmem:[#allocation5 + $0xc0] sm:$0xff]  ;;  %v299_v32 = vld [vmem:[#allocation5 + $0xc8] sm:$0xff] }
 0x151   :  { %v339_v33 = vld [vmem:[#allocation13] sm:$0x1]  ;;  %v3997_v36 = vld [vmem:[#allocation7] sm:$0xff]   ;;  %v4001_v37 = vld [vmem:[#allocation22] ss:$0 sm:$0xff]  ;;  %p3567_p0 = pnand %p3566_p13, %p3560_p10 }
 0x152   :  { %2732 = vmatmul.mubr.msk.f32.gmra.mrb[4].mxu0 %vm365_vm1, %v279_v12  ;;  %3076 = vmatprep.subr.msk.bf16.mxu1 %vm740_vm2, %v339_v33  ;;  %v794_v34 = vsel %vm740_vm2, %v339_v33, 0  ;;  %v348_v35 = vld [vmem:[#allocation23] sm:$0xff] }
 0x153   :  { %2734 = vmatprep.mubr.msk.f32.mxu0 %vm365_vm1, %v280_v13  ;;  %2774 = vmatpush3.bf16.msra.mxu1 %v794_v34  ;;  %v4015_v5 = vld [vmem:[#allocation7 + $0x8] sm:$0xff]   ;;  %v4019_v9 = vld [vmem:[#allocation7 + $0x10] sm:$0xff]  }
 0x154   :  { %2811 = vmatprep.subr.mxu0 %v348_v35 }
 0x155   :  { %2812 = vmatpush3.msra.mxu0 %v348_v35 }
 0x156   :  { %2735 = vmatmul.mubr.msk.f32.gmra.mrb[6].mxu0 %vm365_vm1, %v281_v14 }
 0x157   :  { %2737 = vmatprep.mubr.msk.f32.mxu0 %vm365_vm1, %v282_v15  ;;  %2776 = vmatmul.mubr.msk.bf16.vlgmr.msra.gmra.mrb[8].mxu1 %vm733_vm3, %v3104_v10 }
 0x158   :  { %2783 = vmatprep.mubr.msk.bf16.mxu1 %vm917_vm4, %v3997_v36 }
 0x15a   :  { %2738 = vmatmul.mubr.msk.f32.gmra.mrb[8].mxu0 %vm365_vm1, %v283_v16 }
 0x15b   :  { %2740 = vmatprep.mubr.msk.f32.mxu0 %vm365_vm1, %v284_v17 }
 0x15e   :  { %2741 = vmatmul.mubr.msk.f32.gmra.mrb[10].mxu0 %vm365_vm1, %v285_v18 }
 0x15f   :  { %2743 = vmatprep.mubr.msk.f32.mxu0 %vm365_vm1, %v286_v19 }
 0x162   :  { %2744 = vmatmul.mubr.msk.f32.gmra.mrb[12].mxu0 %vm365_vm1, %v287_v20 }
 0x163   :  { %2746 = vmatprep.mubr.msk.f32.mxu0 %vm365_vm1, %v288_v21 }
 0x166   :  { %2747 = vmatmul.mubr.msk.f32.gmra.mrb[14].mxu0 %vm365_vm1, %v289_v22 }
 0x167   :  { %2749 = vmatprep.mubr.msk.f32.mxu0 %vm365_vm1, %v290_v23 }
 0x16a   :  { %2750 = vmatmul.mubr.msk.f32.gmra.mrb[16].mxu0 %vm365_vm1, %v291_v24  ;;  %v4045_v24 = vld [vmem:[#allocation7 + $0x18] sm:$0xff]  }
 0x16b   :  { %2752 = vmatprep.mubr.msk.f32.mxu0 %vm365_vm1, %v292_v25 }
 0x16e   :  { %2753 = vmatmul.mubr.msk.f32.gmra.mrb[18].mxu0 %vm365_vm1, %v293_v26 }
 0x16f   :  { %2755 = vmatprep.mubr.msk.f32.mxu0 %vm365_vm1, %v294_v27 }
 0x172   :  { %2756 = vmatmul.mubr.msk.f32.gmra.mrb[20].mxu0 %vm365_vm1, %v295_v28  ;;  %v4049_v28 = vld [vmem:[#allocation7 + $0x20] sm:$0xff]  }
 0x173   :  { %2758 = vmatprep.mubr.msk.f32.mxu0 %vm365_vm1, %v296_v29 }
 0x176   :  { %2759 = vmatmul.mubr.msk.f32.gmra.mrb[22].mxu0 %vm365_vm1, %v297_v30 }
 0x177   :  { %2761 = vmatprep.mubr.msk.f32.mxu0 %vm365_vm1, %v298_v31 }
 0x17a   :  { %2762 = vmatmul.mubr.msk.f32.gmra.mrb[24].mxu0 %vm365_vm1, %v299_v32 }
 0x21d   :  { %v2727_v38 = vpop.f32.mrb[0].mxu0  ;;  %v4003_v39 = vpop.f32.mrb[0].mxu1 }
 0x21e   :  { %v526_v40 = vadd.f32 %v2727_v38, %v4001_v37  ;;  %v520_v41 = vpop.f32.mrb[1].mxu0  ;;  %v4006_v42 = vpop.f32.mrb[1].mxu1 }
 0x21f   :  { %v521_v43 = vadd.f32 %v4001_v37, %v520_v41 }
 0x220   :  { %v661_v44 = vmul.f32 1.442695, %v526_v40 }
 0x221   :  { %v659_v45 = vmul.f32 1.442695, %v521_v43  ;;  %v2730_v46 = vpop.f32.mrb[2].mxu0 }
 0x222   :  { %v536_v47 = vadd.f32 %v2730_v46, %v4001_v37  ;;  %v2771_v48 = vpop.f32.mrb[4].mxu1  ;;  %v530_v49 = vpop.f32.mrb[3].mxu0  ;;  %3121 = vpow2.f32 %v661_v44  ;;  %v4073_v46 = vld [vmem:[#allocation7 + $0x28] sm:$0xff]  }
 0x223   :  { %v531_v50 = vadd.f32 %v4001_v37, %v530_v49  ;;  %v778_v51 = vpop.f32.mrb[5].mxu1  ;;  %3123 = vpow2.f32 %v659_v45 }
 0x224   :  { %v665_v52 = vmul.f32 1.442695, %v536_v47  ;;  %v2772_v53 = vpop.f32.mrb[6].mxu1 }
 0x225   :  { %v663_v54 = vmul.f32 1.442695, %v531_v50  ;;  %v846_v55 = vpack.c.bf16 %v2772_v53, %v2771_v48  ;;  %v781_v56 = vpop.f32.mrb[7].mxu1  ;;  %v2733_v57 = vpop.f32.mrb[4].mxu0  ;;  %v4077_v50 = vld [vmem:[#allocation7 + $0x30] sm:$0xff]  }
 0x226   :  { %3125 = vpow2.f32 %v665_v52  ;;  %v845_v58 = vpack.c.bf16 %v781_v56, %v778_v51  ;;  %v546_v59 = vadd.f32 %v2733_v57, %v4001_v37  ;;  %v540_v60 = vpop.f32.mrb[5].mxu0 }
 0x227   :  { %3127 = vpow2.f32 %v663_v54  ;;  %v541_v61 = vadd.f32 %v4001_v37, %v540_v60 }
 0x228   :  { %v669_v62 = vmul.f32 1.442695, %v546_v59  ;;  %2779 = vmatprep.subr.bf16.mxu1 %v845_v58 }
 0x229   :  { %v667_v63 = vmul.f32 1.442695, %v541_v61  ;;  %2780 = vmatpush3.bf16.msra.mxu1 %v845_v58  ;;  %v2736_v0 = vpop.f32.mrb[6].mxu0 }
 0x22a   :  { %3129 = vpow2.f32 %v669_v62  ;;  %v556_v1 = vadd.f32 %v2736_v0, %v4001_v37  ;;  %2781 = vmatprep.subr.bf16.mxu1 %v846_v55  ;;  %v550_v2 = vpop.f32.mrb[7].mxu0  ;;  %v4101_v0 = vld [vmem:[#allocation7 + $0x38] sm:$0xff]  }
 0x22b   :  { %3131 = vpow2.f32 %v667_v63  ;;  %v551_v3 = vadd.f32 %v4001_v37, %v550_v2 }
 0x22c   :  { %v673_v4 = vmul.f32 1.442695, %v556_v1  ;;  %v4017_v6 = vpop.eup %3121 }
 0x22d   :  { %v671_v7 = vmul.f32 1.442695, %v551_v3  ;;  %2782 = vmatpush3.bf16.msra.mxu1 %v846_v55  ;;  %v2739_v8 = vpop.f32.mrb[8].mxu0  ;;  %v4021_v10 = vpop.eup %3123 }
 0x22e   :  { %3133 = vpow2.f32 %v673_v4  ;;  %v566_v11 = vadd.f32 %v2739_v8, %v4001_v37  ;;  %v560_v12 = vpop.f32.mrb[9].mxu0  ;;  %2813 = vmatprep.mubr.msk.f32.mxu0 %vm1105_vm5, %v4021_v10  ;;  %v4105_v4 = vld [vmem:[#allocation7 + $0x40] sm:$0xff]  }
 0x22f   :  { %3135 = vpow2.f32 %v671_v7  ;;  %v561_v13 = vadd.f32 %v4001_v37, %v560_v12  ;;  %2814 = vmatmul.mubr.msk.f32.vlgmr.msra.gmra.mrb[26].mxu0 %vm1105_vm5, %v4017_v6 }
 0x230   :  { %v4027_v14 = vpop.eup %3125  ;;  %v677_v15 = vmul.f32 1.442695, %v566_v11  ;;  %2784 = vmatmul.mubr.msk.bf16.vlgmr.msra.gmra.mrb[12].mxu1 %vm917_vm4, %v4015_v5 }
 0x231   :  { %v4033_v16 = vpop.eup %3127  ;;  %v675_v17 = vmul.f32 1.442695, %v561_v13  ;;  %v2742_v18 = vpop.f32.mrb[10].mxu0  ;;  %2787 = vmatprep.mubr.msk.bf16.mxu1 %vm917_vm4, %v4019_v9 }
 0x232   :  { %3137 = vpow2.f32 %v677_v15  ;;  %v576_v19 = vadd.f32 %v2742_v18, %v4001_v37  ;;  %v570_v20 = vpop.f32.mrb[11].mxu0  ;;  %2816 = vmatprep.mubr.msk.f32.mxu0 %vm1105_vm5, %v4033_v16 }
 0x233   :  { %3139 = vpow2.f32 %v675_v17  ;;  %v571_v21 = vadd.f32 %v4001_v37, %v570_v20  ;;  %2817 = vmatmul.mubr.msk.f32.gmra.mrb[28].mxu0 %vm1105_vm5, %v4027_v14 }
 0x234   :  { %v4041_v22 = vpop.eup %3129  ;;  %v681_v23 = vmul.f32 1.442695, %v576_v19 }
 0x235   :  { %v4047_v25 = vpop.eup %3131  ;;  %v679_v26 = vmul.f32 1.442695, %v571_v21  ;;  %v2745_v27 = vpop.f32.mrb[12].mxu0 }
 0x236   :  { %3141 = vpow2.f32 %v681_v23  ;;  %v586_v29 = vadd.f32 %v2745_v27, %v4001_v37  ;;  %v580_v30 = vpop.f32.mrb[13].mxu0  ;;  %2819 = vmatprep.mubr.msk.f32.mxu0 %vm1105_vm5, %v4047_v25  ;;  %v4129_v27 = vld [vmem:[#allocation7 + $0x48] sm:$0xff]  }
 0x237   :  { %3143 = vpow2.f32 %v679_v26  ;;  %v581_v31 = vadd.f32 %v4001_v37, %v580_v30  ;;  %2820 = vmatmul.mubr.msk.f32.gmra.mrb[30].mxu0 %vm1105_vm5, %v4041_v22 }
 0x238   :  { %v4055_v32 = vpop.eup %3133  ;;  %v685_v33 = vmul.f32 1.442695, %v586_v29  ;;  %2788 = vmatmul.mubr.msk.bf16.gmra.mrb[16].mxu1 %vm917_vm4, %v4045_v24 }
 0x239   :  { %v4061_v34 = vpop.eup %3135  ;;  %v683_v35 = vmul.f32 1.442695, %v581_v31  ;;  %v2748_v38 = vpop.f32.mrb[14].mxu0  ;;  %2791 = vmatprep.mubr.msk.bf16.mxu1 %vm917_vm4, %v4049_v28 }
 0x23a   :  { %3145 = vpow2.f32 %v685_v33  ;;  %v596_v40 = vadd.f32 %v2748_v38, %v4001_v37  ;;  %v590_v41 = vpop.f32.mrb[15].mxu0  ;;  %2822 = vmatprep.mubr.msk.f32.mxu0 %vm1105_vm5, %v4061_v34  ;;  %v4133_v33 = vld [vmem:[#allocation7 + $0x50] sm:$0xff]  }
 0x23b   :  { %3147 = vpow2.f32 %v683_v35  ;;  %v591_v43 = vadd.f32 %v4001_v37, %v590_v41  ;;  %2823 = vmatmul.mubr.msk.f32.gmra.mrb[32].mxu0 %vm1105_vm5, %v4055_v32  ;;  %4532 = vst [vmem:[#allocation40_spill] sm:$0xff] %v4133_v33  ;;  %v651_v35 = vadd.f32 %v4001_v37, %v4006_v42 }
 0x23c   :  { %v4069_v44 = vpop.eup %3137  ;;  %v689_v45 = vmul.f32 1.442695, %v596_v40 }
 0x23d   :  { %v4075_v47 = vpop.eup %3139  ;;  %v687_v48 = vmul.f32 1.442695, %v591_v43  ;;  %v2751_v49 = vpop.f32.mrb[16].mxu0 }
 0x23e   :  { %3149 = vpow2.f32 %v689_v45  ;;  %v606_v51 = vadd.f32 %v2751_v49, %v4001_v37  ;;  %v600_v52 = vpop.f32.mrb[17].mxu0  ;;  %2825 = vmatprep.mubr.msk.f32.mxu0 %vm1105_vm5, %v4075_v47 }
 0x23f   :  { %3151 = vpow2.f32 %v687_v48  ;;  %v601_v53 = vadd.f32 %v4001_v37, %v600_v52  ;;  %2826 = vmatmul.mubr.msk.f32.gmra.mrb[34].mxu0 %vm1105_vm5, %v4069_v44  ;;  %v656_v48 = vadd.f32 %v4003_v39, %v4001_v37  ;;  %v4163_v39 = vld [vmem:[#allocation7 + $0x60] sm:$0xff]  }
 0x240   :  { %v4083_v54 = vpop.eup %3141  ;;  %v693_v55 = vmul.f32 1.442695, %v606_v51  ;;  %2792 = vmatmul.mubr.msk.bf16.gmra.mrb[20].mxu1 %vm917_vm4, %v4073_v46  ;;  %v711_v51 = vmul.f32 1.442695, %v651_v35  ;;  %4534 = vst [vmem:[#allocation42_spill] sm:$0xff] %v4163_v39 }
 0x241   :  { %v4089_v56 = vpop.eup %3143  ;;  %v691_v57 = vmul.f32 1.442695, %v601_v53  ;;  %v2754_v58 = vpop.f32.mrb[18].mxu0  ;;  %2795 = vmatprep.mubr.msk.bf16.mxu1 %vm917_vm4, %v4077_v50  ;;  %v4159_v53 = vld [vmem:[#allocation7 + $0x58] sm:$0xff]  }
 0x242   :  { %3153 = vpow2.f32 %v693_v55  ;;  %v616_v59 = vadd.f32 %v2754_v58, %v4001_v37  ;;  %v610_v60 = vpop.f32.mrb[19].mxu0  ;;  %2828 = vmatprep.mubr.msk.f32.mxu0 %vm1105_vm5, %v4089_v56  ;;  %4533 = vst [vmem:[#allocation41_spill] sm:$0xff] %v4159_v53 }
 0x243   :  { %3155 = vpow2.f32 %v691_v57  ;;  %v611_v61 = vadd.f32 %v4001_v37, %v610_v60  ;;  %2829 = vmatmul.mubr.msk.f32.gmra.mrb[36].mxu0 %vm1105_vm5, %v4083_v54  ;;  %v4183_v60 = vld [vmem:[#allocation7 + $0x68] sm:$0xff]  }
 0x244   :  { %v4097_v62 = vpop.eup %3145  ;;  %v697_v63 = vmul.f32 1.442695, %v616_v59  ;;  %4535 = vst [vmem:[#allocation43_spill] sm:$0xff] %v4183_v60 }
 0x245   :  { %v4103_v1 = vpop.eup %3147  ;;  %v695_v2 = vmul.f32 1.442695, %v611_v61  ;;  %v2757_v3 = vpop.f32.mrb[20].mxu0 }
 0x246   :  { %3157 = vpow2.f32 %v697_v63  ;;  %v626_v7 = vadd.f32 %v2757_v3, %v4001_v37  ;;  %v620_v8 = vpop.f32.mrb[21].mxu0  ;;  %2831 = vmatprep.mubr.msk.f32.mxu0 %vm1105_vm5, %v4103_v1  ;;  %v4203_v3 = vpop.f32.mrb[8].mxu1 }
 0x247   :  { %3159 = vpow2.f32 %v695_v2  ;;  %v621_v11 = vadd.f32 %v4001_v37, %v620_v8  ;;  %2832 = vmatmul.mubr.msk.f32.gmra.mrb[38].mxu0 %vm1105_vm5, %v4097_v62 }
 0x248   :  { %v4111_v12 = vpop.eup %3149  ;;  %v701_v13 = vmul.f32 1.442695, %v626_v7  ;;  %2796 = vmatmul.mubr.msk.bf16.gmra.mrb[24].mxu1 %vm917_vm4, %v4101_v0  ;;  %v4205_v7 = vpop.f32.mrb[9].mxu1 }
 0x249   :  { %v4117_v15 = vpop.eup %3151  ;;  %v699_v17 = vmul.f32 1.442695, %v621_v11  ;;  %v2760_v18 = vpop.f32.mrb[22].mxu0  ;;  %2799 = vmatprep.mubr.msk.bf16.mxu1 %vm917_vm4, %v4105_v4 }
 0x24a   :  { %3161 = vpow2.f32 %v701_v13  ;;  %v636_v19 = vadd.f32 %v2760_v18, %v4001_v37  ;;  %v630_v20 = vpop.f32.mrb[23].mxu0  ;;  %2834 = vmatprep.mubr.msk.f32.mxu0 %vm1105_vm5, %v4117_v15  ;;  %v4207_v8 = vpop.f32.mrb[10].mxu1  ;;  %v4504_v13 = vmov 0.0|0.0  }
 0x24b   :  { %3163 = vpow2.f32 %v699_v17  ;;  %v631_v21 = vadd.f32 %v4001_v37, %v630_v20  ;;  %2835 = vmatmul.mubr.msk.f32.gmra.mrb[40].mxu0 %vm1105_vm5, %v4111_v12  ;;  %v4209_v11 = vpop.f32.mrb[11].mxu1  ;;  %2973 = vmatprep.subr.bf16.mxu1 %v4504_v13  ;;  %v4212_v17 = vld [vmem:[#allocation8] sm:$0xff] }
 0x24c   :  { %v4125_v23 = vpop.eup %3153  ;;  %v705_v26 = vmul.f32 1.442695, %v636_v19  ;;  %v4507_v18 = vunpack.c.h.bf16 %v4212_v17 }
 0x24d   :  { %v4131_v29 = vpop.eup %3155  ;;  %v703_v30 = vmul.f32 1.442695, %v631_v21  ;;  %v2763_v31 = vpop.f32.mrb[24].mxu0 }
 0x24e   :  { %3165 = vpow2.f32 %v705_v26  ;;  %v646_v38 = vadd.f32 %v2763_v31, %v4001_v37  ;;  %v640_v40 = vpop.f32.mrb[25].mxu0  ;;  %2837 = vmatprep.mubr.msk.f32.mxu0 %vm1105_vm5, %v4131_v29 }
 0x24f   :  { %3167 = vpow2.f32 %v703_v30  ;;  %v641_v41 = vadd.f32 %v4001_v37, %v640_v40  ;;  %2838 = vmatmul.mubr.msk.f32.gmra.mrb[42].mxu0 %vm1105_vm5, %v4125_v23  ;;  %v713_v37 = vmul.f32 1.442695, %v656_v48 }
 0x250   :  { %v4141_v43 = vpop.eup %3157  ;;  %v709_v45 = vmul.f32 1.442695, %v646_v38  ;;  %2800 = vmatmul.mubr.msk.bf16.gmra.mrb[28].mxu1 %vm917_vm4, %v4129_v27 }
 0x251   :  { %v4147_v42 = vpop.eup %3159  ;;  %v707_v49 = vmul.f32 1.442695, %v641_v41  ;;  %2803 = vmatprep.mubr.msk.bf16.mxu1 %vm917_vm4, %v4133_v33 }
 0x252   :  { %3169 = vpow2.f32 %v709_v45  ;;  %2840 = vmatprep.mubr.msk.f32.mxu0 %vm1105_vm5, %v4147_v42 }
 0x253   :  { %3171 = vpow2.f32 %v707_v49  ;;  %2841 = vmatmul.mubr.msk.f32.gmra.mrb[44].mxu0 %vm1105_vm5, %v4141_v43 }
 0x254   :  { %v4155_v52 = vpop.eup %3161  ;;  %3173 = vpow2.f32 %v711_v51 }
 0x255   :  { %v4161_v55 = vpop.eup %3163  ;;  %3175 = vpow2.f32 %v713_v37 }
 0x256   :  { %2843 = vmatprep.mubr.msk.f32.mxu0 %vm1105_vm5, %v4161_v55 }
 0x257   :  { %2844 = vmatmul.mubr.msk.f32.gmra.mrb[46].mxu0 %vm1105_vm5, %v4155_v52 }
 0x258   :  { %v4167_v57 = vpop.eup %3165  ;;  %2804 = vmatmul.mubr.msk.bf16.gmra.mrb[32].mxu1 %vm917_vm4, %v4159_v53 }
 0x259   :  { %v4173_v58 = vpop.eup %3167  ;;  %2807 = vmatprep.mubr.msk.bf16.mxu1 %vm917_vm4, %v4163_v39 }
 0x25a   :  { %2846 = vmatprep.mubr.msk.f32.mxu0 %vm1105_vm5, %v4173_v58 }
 0x25b   :  { %2847 = vmatmul.mubr.msk.f32.gmra.mrb[48].mxu0 %vm1105_vm5, %v4167_v57 }
 0x25c   :  { %v4179_v59 = vpop.eup %3169 }
 0x25d   :  { %v4185_v61 = vpop.eup %3171 }
 0x25e   :  { %2849 = vmatprep.mubr.msk.f32.mxu0 %vm1105_vm5, %v4185_v61  ;;  %v4189_v63 = vpop.eup %3173 }
 0x25f   :  { %2850 = vmatmul.mubr.msk.f32.gmra.mrb[50].mxu0 %vm1105_vm5, %v4179_v59  ;;  %v4197_v2 = vpop.eup %3175 }
 0x260   :  { %2808 = vmatmul.mubr.msk.bf16.gmra.mrb[36].mxu1 %vm917_vm4, %v4183_v60  ;;  %2852 = vmatprep.mubr.msk.f32.mxu0 %vm1105_vm5, %v4189_v63 }
 0x261   :  { %2504 = vmatprep.mubr.msk.f32.mxu1 %vm1423_vm6, %v4507_v18  ;;  %v4536_v18 = vmov 0.0|0.0  }
 0x263   :  { %2853 = vmatmul.mubr.msk.f32.gmra.mrb[52].mxu0 %vm1105_vm5, %v4197_v2 }
 0x264   :  { %2893 = vmatprep.mubr.msk.bf16.mxu0 %vm917_vm4, %v3997_v36 }
 0x302   :  { %v2815_v19 = vpop.f32.mrb[26].mxu0 }
 0x303   :  { %v2785_v36 = vpop.f32.mrb[12].mxu1  ;;  %v1256_v21 = vpop.f32.mrb[27].mxu0 }
 0x304   :  { %v994_v20 = vpop.f32.mrb[13].mxu1 }
 0x305   :  { %v1395_v26 = vmul.f32 %v1256_v21, %v994_v20  ;;  %v2786_v30 = vpop.f32.mrb[14].mxu1 }
 0x306   :  { %v997_v31 = vpop.f32.mrb[15].mxu1  ;;  %v2818_v38 = vpop.f32.mrb[28].mxu0 }
 0x307   :  { %v1396_v35 = vmul.f32 %v2815_v19, %v997_v31  ;;  %v1398_v40 = vmul.f32 %v2818_v38, %v2786_v30  ;;  %v1266_v41 = vpop.f32.mrb[29].mxu0 }
 0x308   :  { %v1397_v48 = vmul.f32 %v2785_v36, %v1266_v41 }
 0x309   :  { %v2974_v45 = vpack.c.bf16 %v1396_v35, %v1395_v26 }
 0x30a   :  { %v2977_v49 = vpack.c.bf16 %v1398_v40, %v1397_v48  ;;  %v2821_v37 = vpop.f32.mrb[30].mxu0 }
 0x30b   :  { %v2789_v51 = vpop.f32.mrb[16].mxu1  ;;  %2975 = vmatpush1.bf16.msra.mxu1 %v2974_v45  ;;  %v1276_v60 = vpop.f32.mrb[31].mxu0 }
 0x30c   :  { %v1010_v13 = vpop.f32.mrb[17].mxu1  ;;  %2976 = vmatprep.subr.bf16.mxu1 %v4536_v18 }
 0x30d   :  { %v1399_v39 = vmul.f32 %v1276_v60, %v1010_v13  ;;  %v2790_v53 = vpop.f32.mrb[18].mxu1 }
 0x30e   :  { %v1013_v33 = vpop.f32.mrb[19].mxu1  ;;  %v2824_v21 = vpop.f32.mrb[32].mxu0 }
 0x30f   :  { %v1400_v20 = vmul.f32 %v2821_v37, %v1013_v33  ;;  %2978 = vmatpush1.bf16.msra.mxu1 %v2977_v49  ;;  %v1402_v19 = vmul.f32 %v2824_v21, %v2790_v53  ;;  %v1286_v31 = vpop.f32.mrb[33].mxu0 }
 0x310   :  { %2979 = vmatprep.subr.bf16.mxu1 %v4536_v18  ;;  %v1401_v36 = vmul.f32 %v2789_v51, %v1286_v31 }
 0x311   :  { %v2980_v26 = vpack.c.bf16 %v1400_v20, %v1399_v39 }
 0x312   :  { %v2983_v30 = vpack.c.bf16 %v1402_v19, %v1401_v36  ;;  %v2827_v38 = vpop.f32.mrb[34].mxu0 }
 0x313   :  { %v2793_v35 = vpop.f32.mrb[20].mxu1  ;;  %2981 = vmatpush1.bf16.msra.mxu1 %v2980_v26  ;;  %v1296_v41 = vpop.f32.mrb[35].mxu0 }
 0x314   :  { %v1026_v40 = vpop.f32.mrb[21].mxu1  ;;  %2982 = vmatprep.subr.bf16.mxu1 %v4536_v18 }
 0x315   :  { %v1403_v60 = vmul.f32 %v1296_v41, %v1026_v40  ;;  %v2794_v13 = vpop.f32.mrb[22].mxu1 }
 0x316   :  { %v1029_v45 = vpop.f32.mrb[23].mxu1  ;;  %v2830_v48 = vpop.f32.mrb[36].mxu0 }
 0x317   :  { %v1404_v33 = vmul.f32 %v2827_v38, %v1029_v45  ;;  %2984 = vmatpush1.bf16.msra.mxu1 %v2983_v30  ;;  %v1406_v53 = vmul.f32 %v2830_v48, %v2794_v13  ;;  %v1306_v49 = vpop.f32.mrb[37].mxu0 }
 0x318   :  { %2985 = vmatprep.subr.bf16.mxu1 %v4536_v18  ;;  %v1405_v51 = vmul.f32 %v2793_v35, %v1306_v49 }
 0x319   :  { %v2986_v39 = vpack.c.bf16 %v1404_v33, %v1403_v60 }
 0x31a   :  { %v2989_v37 = vpack.c.bf16 %v1406_v53, %v1405_v51  ;;  %v2833_v21 = vpop.f32.mrb[38].mxu0 }
 0x31b   :  { %v2797_v20 = vpop.f32.mrb[24].mxu1  ;;  %2987 = vmatpush1.bf16.msra.mxu1 %v2986_v39  ;;  %v1316_v31 = vpop.f32.mrb[39].mxu0 }
 0x31c   :  { %v1042_v19 = vpop.f32.mrb[25].mxu1  ;;  %2988 = vmatprep.subr.bf16.mxu1 %v4536_v18 }
 0x31d   :  { %v1407_v26 = vmul.f32 %v1316_v31, %v1042_v19  ;;  %v2798_v36 = vpop.f32.mrb[26].mxu1 }
 0x31e   :  { %v1045_v40 = vpop.f32.mrb[27].mxu1  ;;  %v2836_v41 = vpop.f32.mrb[40].mxu0 }
 0x31f   :  { %v1408_v38 = vmul.f32 %v2833_v21, %v1045_v40  ;;  %2990 = vmatpush1.bf16.msra.mxu1 %v2989_v37  ;;  %v1410_v30 = vmul.f32 %v2836_v41, %v2798_v36  ;;  %v1326_v13 = vpop.f32.mrb[41].mxu0 }
 0x320   :  { %2991 = vmatprep.subr.bf16.mxu1 %v4536_v18  ;;  %v1409_v35 = vmul.f32 %v2797_v20, %v1326_v13 }
 0x321   :  { %v2992_v60 = vpack.c.bf16 %v1408_v38, %v1407_v26 }
 0x322   :  { %v2995_v45 = vpack.c.bf16 %v1410_v30, %v1409_v35  ;;  %v2839_v48 = vpop.f32.mrb[42].mxu0 }
 0x323   :  { %v2801_v33 = vpop.f32.mrb[28].mxu1  ;;  %2993 = vmatpush1.bf16.msra.mxu1 %v2992_v60  ;;  %v1336_v49 = vpop.f32.mrb[43].mxu0 }
 0x324   :  { %v1058_v53 = vpop.f32.mrb[29].mxu1  ;;  %2994 = vmatprep.subr.bf16.mxu1 %v4536_v18 }
 0x325   :  { %v1411_v39 = vmul.f32 %v1336_v49, %v1058_v53  ;;  %v2802_v51 = vpop.f32.mrb[30].mxu1 }
 0x326   :  { %v1061_v19 = vpop.f32.mrb[31].mxu1  ;;  %v2842_v31 = vpop.f32.mrb[44].mxu0 }
 0x327   :  { %v1412_v21 = vmul.f32 %v2839_v48, %v1061_v19  ;;  %2996 = vmatpush1.bf16.msra.mxu1 %v2995_v45  ;;  %v1414_v37 = vmul.f32 %v2842_v31, %v2802_v51  ;;  %v1346_v36 = vpop.f32.mrb[45].mxu0 }
 0x328   :  { %2997 = vmatprep.subr.bf16.mxu1 %v4536_v18  ;;  %v1413_v20 = vmul.f32 %v2801_v33, %v1346_v36 }
 0x329   :  { %v2998_v26 = vpack.c.bf16 %v1412_v21, %v1411_v39 }
 0x32a   :  { %v3001_v40 = vpack.c.bf16 %v1414_v37, %v1413_v20  ;;  %v2845_v41 = vpop.f32.mrb[46].mxu0 }
 0x32b   :  { %v2805_v38 = vpop.f32.mrb[32].mxu1  ;;  %2999 = vmatpush1.bf16.msra.mxu1 %v2998_v26  ;;  %v1356_v13 = vpop.f32.mrb[47].mxu0 }
 0x32c   :  { %v1074_v30 = vpop.f32.mrb[33].mxu1  ;;  %3000 = vmatprep.subr.bf16.mxu1 %v4536_v18 }
 0x32d   :  { %v1415_v60 = vmul.f32 %v1356_v13, %v1074_v30  ;;  %v2806_v35 = vpop.f32.mrb[34].mxu1 }
 0x32e   :  { %v1077_v53 = vpop.f32.mrb[35].mxu1  ;;  %v2848_v49 = vpop.f32.mrb[48].mxu0 }
 0x32f   :  { %v1416_v48 = vmul.f32 %v2845_v41, %v1077_v53  ;;  %3002 = vmatpush1.bf16.msra.mxu1 %v3001_v40  ;;  %v1418_v45 = vmul.f32 %v2848_v49, %v2806_v35  ;;  %v1366_v51 = vpop.f32.mrb[49].mxu0  ;;  %v349_v53 = vld [vmem:[#allocation25] sm:$0xff] }
 0x330   :  { %3003 = vmatprep.subr.bf16.mxu1 %v4536_v18  ;;  %v1417_v33 = vmul.f32 %v2805_v38, %v1366_v51 }
 0x331   :  { %v3004_v39 = vpack.c.bf16 %v1416_v48, %v1415_v60  ;;  %v350_v48 = vld [vmem:[#allocation25 + $0x8] sm:$0xff] }
 0x332   :  { %v3007_v19 = vpack.c.bf16 %v1418_v45, %v1417_v33  ;;  %v2851_v31 = vpop.f32.mrb[50].mxu0  ;;  %v4231_v45 = vld [vmem:[#allocation8 + $0x8] sm:$0xff]  ;;  %v3015_v51 = vpack.c.bf16 %v350_v48, %v349_v53  ;;  %v352_v33 = vld [vmem:[#allocation25 + $0x18] sm:$0xff] }
 0x333   :  { %v2809_v21 = vpop.f32.mrb[36].mxu1  ;;  %3005 = vmatpush1.bf16.msra.mxu1 %v3004_v39  ;;  %v1376_v36 = vpop.f32.mrb[51].mxu0  ;;  %v351_v39 = vld [vmem:[#allocation25 + $0x10] sm:$0xff]  ;;  %v356_v53 = vld [vmem:[#allocation25 + $0x38] sm:$0xff] }
 0x334   :  { %v1090_v37 = vpop.f32.mrb[37].mxu1  ;;  %3006 = vmatprep.subr.bf16.mxu1 %v4536_v18 }
 0x335   :  { %v1419_v26 = vmul.f32 %v1376_v36, %v1090_v37  ;;  %v2810_v20 = vpop.f32.mrb[38].mxu1  ;;  %v4235_v37 = vld [vmem:[#allocation8 + $0x10] sm:$0xff]  ;;  %v353_v36 = vld [vmem:[#allocation25 + $0x20] sm:$0xff] }
 0x336   :  { %v1093_v30 = vpop.f32.mrb[39].mxu1  ;;  %v2854_v13 = vpop.f32.mrb[52].mxu0  ;;  %4537 = vst [vmem:[#allocation44_spill] sm:$0xff] %v4235_v37 }
 0x337   :  { %v1420_v41 = vmul.f32 %v2851_v31, %v1093_v30  ;;  %3008 = vmatpush1.bf16.msra.mxu1 %v3007_v19  ;;  %v1422_v40 = vmul.f32 %v2854_v13, %v2810_v20  ;;  %v1386_v35 = vpop.f32.mrb[53].mxu0  ;;  %v4517_v31 = vunpack.c.l.bf16 %v4212_v17  ;;  %v4516_v19 = vunpack.c.h.bf16 %v4231_v45 }
 0x338   :  { %3009 = vmatprep.subr.bf16.mxu1 %v4536_v18  ;;  %v1421_v38 = vmul.f32 %v2809_v21, %v1386_v35  ;;  %v3019_v21 = vpack.c.bf16 %v352_v33, %v351_v39  ;;  %v4515_v20 = vunpack.c.l.bf16 %v4231_v45  ;;  %v4514_v30 = vunpack.c.h.bf16 %v4235_v37  ;;  %v335_v33 = vld [vmem:[#allocation10 + $0x8] sm:$0xff] }
 0x339   :  { %v3010_v60 = vpack.c.bf16 %v1420_v41, %v1419_v26  ;;  %v354_v26 = vld [vmem:[#allocation25 + $0x28] sm:$0xff]  ;;  %v4244_v41 = vld [vmem:[#allocation8 + $0x18] sm:$0xff]  ;;  %v3623_v39 = vmov 0  }
 0x33a   :  { %v3013_v49 = vpack.c.bf16 %v1422_v40, %v1421_v38  ;;  %4538 = vst [vmem:[#allocation45_spill] sm:$0xff] %v4244_v41  ;;  %v3023_v13 = vpack.c.bf16 %v354_v26, %v353_v36  ;;  %v4513_v40 = vunpack.c.l.bf16 %v4235_v37  ;;  %v4512_v35 = vunpack.c.h.bf16 %v4244_v41  ;;  %v355_v38 = vld [vmem:[#allocation25 + $0x30] sm:$0xff]  ;;  %3101 = vset.pattern.permute.xlu0 %v3623_v39  ;;  %3102 = vset.pattern.permute.xlu1 %v3623_v39  ;;  %v3119_v39 = vld [vmem:[#allocation16] sm:$0xff]  }
 0x33b   :  { %3011 = vmatpush1.bf16.msra.mxu1 %v3010_v60  ;;  %v4511_v60 = vunpack.c.l.bf16 %v4244_v41  ;;  %v3027_v48 = vpack.c.bf16 %v356_v53, %v355_v38 }
 0x33c   :  { %3012 = vmatprep.subr.bf16.mxu1 %v4536_v18 }
 0x33f   :  { %3014 = vmatpush1.bf16.msra.mxu1 %v3013_v49  ;;  %v334_v49 = vld [vmem:[#allocation10] sm:$0xff] }
 0x340   :  { %3016 = vmatprep.subr.bf16.mxu1 %v3015_v51  ;;  %1621 = vperm.xlu0 %3101, %v334_v49   ;;  %v3120_v49 = vld [vmem:[#allocation17] sm:$0xff]  }
 0x342   :  { %1501 = vmatmul.mubr.f32.vlgmr.msra.gmra.mrb[2].mxu1 %v4517_v31 }
 0x343   :  { %2505 = vmatprep.mubr.msk.f32.mxu1 %vm1423_vm6, %v4516_v19  ;;  %3018 = vmatpush3.bf16.msra.mxu1 %v3015_v51  ;;  %v336_v51 = vld [vmem:[#allocation10 + $0x10] sm:$0xff] }
 0x344   :  { %3020 = vmatprep.subr.bf16.mxu1 %v3019_v21  ;;  %1631 = vperm.xlu1 %3102, %v336_v51  }
 0x345   :  { %1626 = vperm.xlu0 %3101, %v335_v33  }
 0x346   :  { %1506 = vmatmul.mubr.f32.gmra.mrb[40].mxu1 %v4515_v20 }
 0x347   :  { %2506 = vmatprep.mubr.msk.f32.mxu1 %vm1423_vm6, %v4514_v30  ;;  %3022 = vmatpush3.bf16.msra.mxu1 %v3019_v21  ;;  %v337_v21 = vld [vmem:[#allocation10 + $0x18] sm:$0xff] }
 0x348   :  { %3024 = vmatprep.subr.bf16.mxu1 %v3023_v13  ;;  %1636 = vperm.xlu1 %3102, %v337_v21  }
 0x34a   :  { %1511 = vmatmul.mubr.f32.gmra.mrb[42].mxu1 %v4513_v40 }
 0x34b   :  { %2507 = vmatprep.mubr.msk.f32.mxu1 %vm1423_vm6, %v4512_v35  ;;  %3026 = vmatpush3.bf16.msra.mxu1 %v3023_v13 }
 0x34c   :  { %3028 = vmatprep.subr.bf16.mxu1 %v3027_v48 }
 0x34e   :  { %1516 = vmatmul.mubr.f32.gmra.mrb[44].mxu1 %v4511_v60 }
 0x34f   :  { %3030 = vmatpush3.bf16.msra.mxu1 %v3027_v48 }
 0x350   :  { %2877 = vmatprep.subr.bf16.mxu1 %v3119_v39 }
 0x3bf   :  { %v4261_v51 = vpop.permute.xlu0 %1621 }
 0x3c0   :  { %4539 = vst [vmem:[#allocation46_spill] sm:$0xff] %v4261_v51 }
 0x3c4   :  { %v4263_v33 = vpop.permute.xlu0 %1626 }
 0x3c5   :  { %4540 = vst [vmem:[#allocation47_spill] sm:$0xff] %v4263_v33 }
 0x415   :  { %v1502_v36 = vpop.f32.mrb[2].mxu1 }
 0x416   :  { %v1504_v26 = vpop.f32.mrb[3].mxu1  ;;  %2871 = vmatprep.mubr.msk.f32.mxu1 %vm1521_vm7, %v1502_v36 }
 0x417   :  { %v2512_v26 = vld [vmem:[#allocation14] ss:$0 sm:$0xff] }
 0x419   :  { %v1507_v13 = vpop.f32.mrb[40].mxu1 }
 0x41a   :  { %v1509_v60 = vpop.f32.mrb[41].mxu1  ;;  %2872 = vmatmul.mubr.msk.f32.vlgmr.msra.gmra.mrb[46].mxu1 %vm1521_vm7, %v1507_v13  ;;  %v4266_v13 = vpop.permute.xlu1 %1631 }
 0x41b   :  { %2878 = vmatpush3.bf16.msra.mxu1 %v3119_v39 }
 0x41c   :  { %2883 = vmatprep.subr.bf16.mxu1 %v3120_v49 }
 0x41d   :  { %v1512_v38 = vpop.f32.mrb[42].mxu1 }
 0x41e   :  { %v1514_v53 = vpop.f32.mrb[43].mxu1  ;;  %2874 = vmatprep.mubr.msk.f32.mxu1 %vm1521_vm7, %v1512_v38  ;;  %v4271_v20 = vpop.permute.xlu1 %1636 }
 0x41f   :  { %4541 = vst [vmem:[#allocation48_spill] sm:$0xff] %v4271_v20 }
 0x421   :  { %v1517_v48 = vpop.f32.mrb[44].mxu1 }
 0x422   :  { %v1519_v35 = vpop.f32.mrb[45].mxu1  ;;  %2875 = vmatmul.mubr.msk.f32.gmra.mrb[48].mxu1 %vm1521_vm7, %v1517_v48 }
 0x4ed   :  { %v2873_v21 = vpop.f32.mrb[46].mxu1 }
 0x4ee   :  { %v1640_v36 = vmul.f32 %v2873_v21, %v4263_v33  ;;  %v1600_v60 = vpop.f32.mrb[47].mxu1 }
 0x4ef   :  { %v1639_v38 = vmul.f32 %v4261_v51, %v1600_v60 }
 0x4f0   :  { %v1644_v35 = vadd.f32 %v1640_v36, %v4209_v11 }
 0x4f1   :  { %v1643_v53 = vadd.f32 %v1639_v38, %v4205_v7 }
 0x4f2   :  { %v1654_v48 = vadd.f32 %v2512_v26, %v1644_v35 }
 0x4f3   :  { %v1653_v39 = vadd.f32 %v2512_v26, %v1643_v53 }
 0x4f4   :  { %v1662_v40 = vmin.f32 %v1654_v48, 0.0  ;;  %vm1658_vm8 = vcmp.gt.f32.partialorder %v1654_v48, 0.0 }
 0x4f5   :  { %v1661_v30 = vmin.f32 %v1653_v39, 0.0  ;;  %v2876_v19 = vpop.f32.mrb[48].mxu1  ;;  %vm1657_vm9 = vcmp.gt.f32.partialorder %v1653_v39, 0.0 }
 0x4f6   :  { %v1667_v31 = vmul.f32 1.442695, %v1662_v40  ;;  %v1642_v21 = vmul.f32 %v2876_v19, %v4271_v20  ;;  %v1610_v33 = vpop.f32.mrb[49].mxu1 }
 0x4f7   :  { %v1665_v41 = vmul.f32 1.442695, %v1661_v30  ;;  %v1641_v37 = vmul.f32 %v4266_v13, %v1610_v33 }
 0x4f8   :  { %3177 = vpow2.f32 %v1667_v31  ;;  %v1646_v60 = vadd.f32 %v4207_v8, %v1642_v21 }
 0x4f9   :  { %3179 = vpow2.f32 %v1665_v41  ;;  %v1645_v7 = vadd.f32 %v4203_v3, %v1641_v37 }
 0x4fa   :  { %v1656_v11 = vadd.f32 %v2512_v26, %v1646_v60 }
 0x4fb   :  { %v1655_v36 = vadd.f32 %v2512_v26, %v1645_v7  ;;  %v357_v7 = vld [vmem:[#allocation26] sm:$0xff] }
 0x4fc   :  { %v1664_v38 = vmin.f32 %v1656_v11, 0.0  ;;  %vm1660_vm11 = vcmp.gt.f32.partialorder %v1656_v11, 0.0 }
 0x4fd   :  { %v1663_v35 = vmin.f32 %v1655_v36, 0.0  ;;  %vm1659_vm12 = vcmp.gt.f32.partialorder %v1655_v36, 0.0 }
 0x4fe   :  { %v1671_v53 = vmul.f32 1.442695, %v1664_v38  ;;  %v358_v38 = vld [vmem:[#allocation28] sm:$0xf] }
 0x4ff   :  { %v1669_v51 = vmul.f32 1.442695, %v1663_v35 }
 0x500   :  { %3181 = vpow2.f32 %v1671_v53 }
 0x501   :  { %3183 = vpow2.f32 %v1669_v51 }
 0x502   :  { %v3178_v40 = vpop.eup %3177 }
 0x503   :  { %v3180_v19 = vpop.eup %3179  ;;  %v2514_v20 = vadd.f32 -1.0, %v3178_v40 }
 0x504   :  { %v2513_v30 = vadd.f32 -1.0, %v3180_v19 }
 0x505   :  { %v1678_v31 = vsel %vm1658_vm8, %v1654_v48, %v2514_v20  ;;  %v4545_v20 = vld [vmem:[#allocation43_spill] sm:$0xff] }
 0x506   :  { %v1677_v33 = vsel %vm1657_vm9, %v1653_v39, %v2513_v30 }
 0x507   :  { %v1681_v8 = vpack.c.bf16 %v1678_v31, %v1677_v33 }
 0x509   :  { %2879 = vmatprep.mubr.msk.bf16.mxu1 %vm1689_vm10, %v1681_v8 }
 0x50a   :  { %v3182_v3 = vpop.eup %3181 }
 0x50b   :  { %v3184_v37 = vpop.eup %3183  ;;  %v2516_v41 = vadd.f32 -1.0, %v3182_v3 }
 0x50c   :  { %v2515_v26 = vadd.f32 -1.0, %v3184_v37 }
 0x50d   :  { %v1680_v21 = vsel %vm1660_vm11, %v1656_v11, %v2516_v41 }
 0x50e   :  { %v1679_v51 = vsel %vm1659_vm12, %v1655_v36, %v2515_v26 }
 0x50f   :  { %v1682_v60 = vpack.c.bf16 %v1680_v21, %v1679_v51 }
 0x511   :  { %2880 = vmatmul.mubr.msk.bf16.vlgmr.msra.gmra.mrb[52].mxu1 %vm1689_vm10, %v1682_v60 }
 0x512   :  { %2885 = vmatprep.mubr.msk.bf16.mxu1 %vm1689_vm10, %v1681_v8  ;;  %2884 = vmatpush3.bf16.msra.mxu1 %v3120_v49  ;;  %v4546_v49 = vunpack.c.h.bf16 %v4212_v17 }
 0x513   :  { %2921 = vmatprep.subr.mxu1 %v357_v7 }
 0x519   :  { %2886 = vmatmul.mubr.msk.bf16.vlgmr.msra.gmra.mrb[56].mxu1 %vm1689_vm10, %v1682_v60 }
 0x51a   :  { %2923 = vmatprep.mubr.msk.f32.mxu1 %vm1105_vm5, %v4021_v10  ;;  %2922 = vmatpush3.msra.mxu1 %v357_v7 }
 0x51b   :  { %2965 = vmatprep.subr.msk.mxu1 %vm450_vm0, %v358_v38 }
 0x521   :  { %2924 = vmatmul.mubr.msk.f32.vlgmr.msra.gmra.mrb[50].mxu1 %vm1105_vm5, %v4017_v6 }
 0x522   :  { %2926 = vmatprep.mubr.msk.f32.mxu1 %vm1105_vm5, %v4033_v16  ;;  %2966 = vmatpush3.msk.msra.mxu1 %vm450_vm0, %v358_v38 }
 0x525   :  { %2927 = vmatmul.mubr.msk.f32.gmra.mrb[60].mxu1 %vm1105_vm5, %v4027_v14 }
 0x526   :  { %2929 = vmatprep.mubr.msk.f32.mxu1 %vm1105_vm5, %v4047_v25 }
 0x529   :  { %2930 = vmatmul.mubr.msk.f32.gmra.mrb[62].mxu1 %vm1105_vm5, %v4041_v22 }
 0x52a   :  { %2932 = vmatprep.mubr.msk.f32.mxu1 %vm1105_vm5, %v4061_v34 }
 0x52d   :  { %2933 = vmatmul.mubr.msk.f32.gmra.mrb[64].mxu1 %vm1105_vm5, %v4055_v32 }
 0x52e   :  { %2935 = vmatprep.mubr.msk.f32.mxu1 %vm1105_vm5, %v4075_v47 }
 0x531   :  { %2936 = vmatmul.mubr.msk.f32.gmra.mrb[66].mxu1 %vm1105_vm5, %v4069_v44 }
 0x532   :  { %2938 = vmatprep.mubr.msk.f32.mxu1 %vm1105_vm5, %v4089_v56 }
 0x535   :  { %2939 = vmatmul.mubr.msk.f32.gmra.mrb[68].mxu1 %vm1105_vm5, %v4083_v54 }
 0x536   :  { %2941 = vmatprep.mubr.msk.f32.mxu1 %vm1105_vm5, %v4103_v1 }
 0x539   :  { %2942 = vmatmul.mubr.msk.f32.gmra.mrb[70].mxu1 %vm1105_vm5, %v4097_v62 }
 0x53a   :  { %2944 = vmatprep.mubr.msk.f32.mxu1 %vm1105_vm5, %v4117_v15 }
 0x53d   :  { %2945 = vmatmul.mubr.msk.f32.gmra.mrb[72].mxu1 %vm1105_vm5, %v4111_v12 }
 0x53e   :  { %2947 = vmatprep.mubr.msk.f32.mxu1 %vm1105_vm5, %v4131_v29 }
 0x541   :  { %2948 = vmatmul.mubr.msk.f32.gmra.mrb[74].mxu1 %vm1105_vm5, %v4125_v23 }
 0x542   :  { %2950 = vmatprep.mubr.msk.f32.mxu1 %vm1105_vm5, %v4147_v42 }
 0x545   :  { %2951 = vmatmul.mubr.msk.f32.gmra.mrb[76].mxu1 %vm1105_vm5, %v4141_v43 }
 0x546   :  { %2953 = vmatprep.mubr.msk.f32.mxu1 %vm1105_vm5, %v4161_v55 }
 0x549   :  { %2954 = vmatmul.mubr.msk.f32.gmra.mrb[78].mxu1 %vm1105_vm5, %v4155_v52 }
 0x54a   :  { %2956 = vmatprep.mubr.msk.f32.mxu1 %vm1105_vm5, %v4173_v58  ;;  %v4543_v58 = vld [vmem:[#allocation41_spill] sm:$0xff] }
 0x54d   :  { %2957 = vmatmul.mubr.msk.f32.gmra.mrb[80].mxu1 %vm1105_vm5, %v4167_v57 }
 0x54e   :  { %2959 = vmatprep.mubr.msk.f32.mxu1 %vm1105_vm5, %v4185_v61 }
 0x551   :  { %2960 = vmatmul.mubr.msk.f32.gmra.mrb[82].mxu1 %vm1105_vm5, %v4179_v59  ;;  %v4544_v59 = vld [vmem:[#allocation42_spill] sm:$0xff] }
 0x552   :  { %2962 = vmatprep.mubr.msk.f32.mxu1 %vm1105_vm5, %v4189_v63 }
 0x555   :  { %2963 = vmatmul.mubr.msk.f32.gmra.mrb[84].mxu1 %vm1105_vm5, %v4197_v2 }
 0x5e4   :  { %v2881_v6 = vpop.f32.mrb[52].mxu1 }
 0x5e5   :  { %v1730_v10 = vpop.f32.mrb[53].mxu1 }
 0x5e6   :  { %v2882_v14 = vpop.f32.mrb[54].mxu1 }
 0x5e7   :  { %v1801_v16 = vpack.c.bf16 %v2882_v14, %v2881_v6  ;;  %v1733_v22 = vpop.f32.mrb[55].mxu1 }
 0x5e8   :  { %v1800_v25 = vpack.c.bf16 %v1733_v22, %v1730_v10 }
 0x5ea   :  { %2889 = vmatprep.subr.bf16.mxu0 %v1800_v25 }
 0x5eb   :  { %2890 = vmatpush3.bf16.msra.mxu0 %v1800_v25 }
 0x5ec   :  { %v4337_v32 = vpop.f32.mrb[56].mxu1  ;;  %2891 = vmatprep.subr.bf16.mxu0 %v1801_v16 }
 0x5ed   :  { %v4339_v34 = vpop.f32.mrb[57].mxu1 }
 0x5ee   :  { %v4341_v44 = vpop.f32.mrb[58].mxu1 }
 0x5ef   :  { %v4343_v47 = vpop.f32.mrb[59].mxu1  ;;  %2892 = vmatpush3.bf16.msra.mxu0 %v1801_v16 }
 0x5f0   :  { %3031 = vmatprep.subr.bf16.mxu0 %v4536_v18 }
 0x5f2   :  { %2894 = vmatmul.mubr.msk.bf16.vlgmr.msra.gmra.mrb[56].mxu0 %vm917_vm4, %v4015_v5 }
 0x5f3   :  { %2897 = vmatprep.mubr.msk.bf16.mxu0 %vm917_vm4, %v4019_v9 }
 0x5f4   :  { %v2925_v54 = vpop.f32.mrb[50].mxu1 }
 0x5f5   :  { %v2013_v56 = vpop.f32.mrb[51].mxu1 }
 0x5f8   :  { %v2928_v62 = vpop.f32.mrb[60].mxu1 }
 0x5f9   :  { %v2023_v1 = vpop.f32.mrb[61].mxu1 }
 0x5fa   :  { %2898 = vmatmul.mubr.msk.bf16.gmra.mrb[60].mxu0 %vm917_vm4, %v4045_v24 }
 0x5fb   :  { %2901 = vmatprep.mubr.msk.bf16.mxu0 %vm917_vm4, %v4049_v28 }
 0x5fc   :  { %v2931_v12 = vpop.f32.mrb[62].mxu1 }
 0x5fd   :  { %v2033_v15 = vpop.f32.mrb[63].mxu1 }
 0x600   :  { %v2934_v23 = vpop.f32.mrb[64].mxu1 }
 0x601   :  { %v2043_v29 = vpop.f32.mrb[65].mxu1 }
 0x602   :  { %2902 = vmatmul.mubr.msk.bf16.gmra.mrb[64].mxu0 %vm917_vm4, %v4073_v46 }
 0x603   :  { %2905 = vmatprep.mubr.msk.bf16.mxu0 %vm917_vm4, %v4077_v50  ;;  %v4542_v50 = vld [vmem:[#allocation40_spill] sm:$0xff] }
 0x604   :  { %v4358_v5 = vpop.f32.mrb[66].mxu1 }
 0x605   :  { %v2053_v9 = vpop.f32.mrb[67].mxu1 }
 0x608   :  { %v2940_v43 = vpop.f32.mrb[68].mxu1 }
 0x609   :  { %v2063_v42 = vpop.f32.mrb[69].mxu1 }
 0x60a   :  { %2906 = vmatmul.mubr.msk.bf16.gmra.mrb[68].mxu0 %vm917_vm4, %v4101_v0 }
 0x60b   :  { %2909 = vmatprep.mubr.msk.bf16.mxu0 %vm917_vm4, %v4105_v4 }
 0x60c   :  { %v4364_v24 = vpop.f32.mrb[70].mxu1 }
 0x60d   :  { %v4366_v28 = vpop.f32.mrb[71].mxu1 }
 0x610   :  { %v4368_v52 = vpop.f32.mrb[72].mxu1 }
 0x611   :  { %v2083_v46 = vpop.f32.mrb[73].mxu1 }
 0x612   :  { %2910 = vmatmul.mubr.msk.bf16.gmra.mrb[72].mxu0 %vm917_vm4, %v4129_v27 }
 0x613   :  { %2913 = vmatprep.mubr.msk.bf16.mxu0 %vm917_vm4, %v4542_v50 }
 0x614   :  { %v4374_v55 = vpop.f32.mrb[74].mxu1 }
 0x615   :  { %v4376_v57 = vpop.f32.mrb[75].mxu1 }
 0x618   :  { %v4378_v0 = vpop.f32.mrb[76].mxu1 }
 0x619   :  { %v4380_v4 = vpop.f32.mrb[77].mxu1 }
 0x61a   :  { %2914 = vmatmul.mubr.msk.bf16.gmra.mrb[76].mxu0 %vm917_vm4, %v4543_v58 }
 0x61b   :  { %2917 = vmatprep.mubr.msk.bf16.mxu0 %vm917_vm4, %v4544_v59 }
 0x61c   :  { %v4386_v61 = vpop.f32.mrb[78].mxu1 }
 0x61d   :  { %v4388_v27 = vpop.f32.mrb[79].mxu1 }
 0x620   :  { %v4390_v63 = vpop.f32.mrb[80].mxu1 }
 0x621   :  { %v4392_v2 = vpop.f32.mrb[81].mxu1 }
 0x622   :  { %2918 = vmatmul.mubr.msk.bf16.gmra.mrb[80].mxu0 %vm917_vm4, %v4545_v20 }
 0x623   :  { %2565 = vmatprep.mubr.msk.f32.mxu0 %vm1423_vm6, %v4546_v49 }
 0x624   :  { %v4399_v48 = vpop.f32.mrb[82].mxu1 }
 0x625   :  { %v4401_v39 = vpop.f32.mrb[83].mxu1 }
 0x628   :  { %v4403_v11 = vpop.f32.mrb[84].mxu1 }
 0x629   :  { %v4405_v36 = vpop.f32.mrb[85].mxu1 }
 0x6c5   :  { %v2895_v35 = vpop.f32.mrb[56].mxu0 }
 0x6c6   :  { %v2154_v53 = vmul.f32 %v2895_v35, %v2023_v1  ;;  %v1836_v40 = vpop.f32.mrb[57].mxu0 }
 0x6c7   :  { %v2152_v19 = vmul.f32 %v2013_v56, %v1836_v40  ;;  %v2896_v30 = vpop.f32.mrb[58].mxu0 }
 0x6c8   :  { %v2155_v31 = vmul.f32 %v2928_v62, %v2896_v30  ;;  %v1839_v33 = vpop.f32.mrb[59].mxu0 }
 0x6c9   :  { %v2153_v8 = vmul.f32 %v2925_v54, %v1839_v33 }
 0x6ca   :  { %v3035_v3 = vpack.c.bf16 %v2155_v31, %v2154_v53 }
 0x6cb   :  { %v3032_v37 = vpack.c.bf16 %v2153_v8, %v2152_v19 }
 0x6cd   :  { %v2899_v41 = vpop.f32.mrb[60].mxu0  ;;  %3033 = vmatpush1.bf16.msra.mxu0 %v3032_v37 }
 0x6ce   :  { %v2158_v26 = vmul.f32 %v2899_v41, %v2043_v29  ;;  %v1852_v21 = vpop.f32.mrb[61].mxu0  ;;  %3034 = vmatprep.subr.bf16.mxu0 %v4536_v18 }
 0x6cf   :  { %v2156_v51 = vmul.f32 %v2033_v15, %v1852_v21  ;;  %v2900_v60 = vpop.f32.mrb[62].mxu0 }
 0x6d0   :  { %v2159_v7 = vmul.f32 %v2934_v23, %v2900_v60  ;;  %v1855_v6 = vpop.f32.mrb[63].mxu0 }
 0x6d1   :  { %v2157_v10 = vmul.f32 %v2931_v12, %v1855_v6  ;;  %3036 = vmatpush1.bf16.msra.mxu0 %v3035_v3 }
 0x6d2   :  { %v3041_v14 = vpack.c.bf16 %v2159_v7, %v2158_v26  ;;  %3037 = vmatprep.subr.bf16.mxu0 %v4536_v18 }
 0x6d3   :  { %v3038_v16 = vpack.c.bf16 %v2157_v10, %v2156_v51 }
 0x6d5   :  { %v2903_v22 = vpop.f32.mrb[64].mxu0  ;;  %3039 = vmatpush1.bf16.msra.mxu0 %v3038_v16 }
 0x6d6   :  { %v2162_v25 = vmul.f32 %v2903_v22, %v2063_v42  ;;  %v1868_v54 = vpop.f32.mrb[65].mxu0  ;;  %3040 = vmatprep.subr.bf16.mxu0 %v4536_v18  ;;  %v4553_v22 = vld [vmem:[#allocation45_spill] sm:$0xff] }
 0x6d7   :  { %v2160_v56 = vmul.f32 %v2053_v9, %v1868_v54  ;;  %v2904_v62 = vpop.f32.mrb[66].mxu0 }
 0x6d8   :  { %v2163_v1 = vmul.f32 %v2940_v43, %v2904_v62  ;;  %v1871_v29 = vpop.f32.mrb[67].mxu0 }
 0x6d9   :  { %v2161_v15 = vmul.f32 %v4358_v5, %v1871_v29  ;;  %3042 = vmatpush1.bf16.msra.mxu0 %v3041_v14 }
 0x6da   :  { %v3047_v23 = vpack.c.bf16 %v2163_v1, %v2162_v25  ;;  %3043 = vmatprep.subr.bf16.mxu0 %v4536_v18 }
 0x6db   :  { %v3044_v12 = vpack.c.bf16 %v2161_v15, %v2160_v56 }
 0x6dd   :  { %v2907_v50 = vpop.f32.mrb[68].mxu0  ;;  %3045 = vmatpush1.bf16.msra.mxu0 %v3044_v12  ;;  %v4556_v12 = vld [vmem:[#allocation47_spill] sm:$0xff] }
 0x6de   :  { %v2166_v58 = vmul.f32 %v2907_v50, %v2083_v46  ;;  %v1884_v59 = vpop.f32.mrb[69].mxu0  ;;  %3046 = vmatprep.subr.bf16.mxu0 %v4536_v18 }
 0x6df   :  { %v2164_v42 = vmul.f32 %v4366_v28, %v1884_v59  ;;  %v2908_v20 = vpop.f32.mrb[70].mxu0  ;;  %v2574_v59 = vld [vmem:[#allocation19] ss:$0 sm:$0xff] }
 0x6e0   :  { %v2167_v9 = vmul.f32 %v4368_v52, %v2908_v20  ;;  %v1887_v43 = vpop.f32.mrb[71].mxu0 }
 0x6e1   :  { %v2165_v49 = vmul.f32 %v4364_v24, %v1887_v43  ;;  %3048 = vmatpush1.bf16.msra.mxu0 %v3047_v23 }
 0x6e2   :  { %v3053_v5 = vpack.c.bf16 %v2167_v9, %v2166_v58  ;;  %3049 = vmatprep.subr.bf16.mxu0 %v4536_v18 }
 0x6e3   :  { %v3050_v38 = vpack.c.bf16 %v2165_v49, %v2164_v42  ;;  %v4557_v42 = vld [vmem:[#allocation46_spill] sm:$0xff] }
 0x6e5   :  { %v2911_v35 = vpop.f32.mrb[72].mxu0  ;;  %3051 = vmatpush1.bf16.msra.mxu0 %v3050_v38 }
 0x6e6   :  { %v2170_v46 = vmul.f32 %v2911_v35, %v4380_v4  ;;  %v1900_v53 = vpop.f32.mrb[73].mxu0  ;;  %3052 = vmatprep.subr.bf16.mxu0 %v4536_v18  ;;  %v4558_v35 = vld [vmem:[#allocation48_spill] sm:$0xff] }
 0x6e7   :  { %v2168_v28 = vmul.f32 %v4376_v57, %v1900_v53  ;;  %v2912_v40 = vpop.f32.mrb[74].mxu0 }
 0x6e8   :  { %v2171_v52 = vmul.f32 %v4378_v0, %v2912_v40  ;;  %v1903_v19 = vpop.f32.mrb[75].mxu0 }
 0x6e9   :  { %v2169_v24 = vmul.f32 %v4374_v55, %v1903_v19  ;;  %3054 = vmatpush1.bf16.msra.mxu0 %v3053_v5 }
 0x6ea   :  { %v3059_v30 = vpack.c.bf16 %v2171_v52, %v2170_v46  ;;  %3055 = vmatprep.subr.bf16.mxu0 %v4536_v18 }
 0x6eb   :  { %v3056_v31 = vpack.c.bf16 %v2169_v24, %v2168_v28 }
 0x6ed   :  { %v2915_v33 = vpop.f32.mrb[76].mxu0  ;;  %3057 = vmatpush1.bf16.msra.mxu0 %v3056_v31 }
 0x6ee   :  { %v2174_v4 = vmul.f32 %v2915_v33, %v4392_v2  ;;  %v1916_v8 = vpop.f32.mrb[77].mxu0  ;;  %3058 = vmatprep.subr.bf16.mxu0 %v4536_v18 }
 0x6ef   :  { %v2172_v57 = vmul.f32 %v4388_v27, %v1916_v8  ;;  %v2916_v3 = vpop.f32.mrb[78].mxu0 }
 0x6f0   :  { %v2175_v0 = vmul.f32 %v4390_v63, %v2916_v3  ;;  %v1919_v37 = vpop.f32.mrb[79].mxu0 }
 0x6f1   :  { %v2173_v55 = vmul.f32 %v4386_v61, %v1919_v37  ;;  %3060 = vmatpush1.bf16.msra.mxu0 %v3059_v30 }
 0x6f2   :  { %v3065_v41 = vpack.c.bf16 %v2175_v0, %v2174_v4  ;;  %3061 = vmatprep.subr.bf16.mxu0 %v4536_v18 }
 0x6f3   :  { %v3062_v26 = vpack.c.bf16 %v2173_v55, %v2172_v57 }
 0x6f5   :  { %v2919_v21 = vpop.f32.mrb[80].mxu0  ;;  %3063 = vmatpush1.bf16.msra.mxu0 %v3062_v26 }
 0x6f6   :  { %v2178_v2 = vmul.f32 %v2919_v21, %v4405_v36  ;;  %v1932_v51 = vpop.f32.mrb[81].mxu0  ;;  %3064 = vmatprep.subr.bf16.mxu0 %v4536_v18  ;;  %v4547_v36 = vunpack.c.l.bf16 %v4212_v17  ;;  %v4555_v17 = vunpack.c.l.bf16 %v4553_v22 }
 0x6f7   :  { %v2176_v27 = vmul.f32 %v4401_v39, %v1932_v51  ;;  %v2920_v60 = vpop.f32.mrb[82].mxu0  ;;  %v4548_v39 = vunpack.c.h.bf16 %v4231_v45 }
 0x6f8   :  { %v2179_v63 = vmul.f32 %v4403_v11, %v2920_v60  ;;  %v1935_v7 = vpop.f32.mrb[83].mxu0  ;;  %v4549_v11 = vunpack.c.l.bf16 %v4231_v45 }
 0x6f9   :  { %v2177_v61 = vmul.f32 %v4399_v48, %v1935_v7  ;;  %3066 = vmatpush1.bf16.msra.mxu0 %v3065_v41  ;;  %v4550_v48 = vld [vmem:[#allocation44_spill] sm:$0xff] }
 0x6fa   :  { %v3071_v6 = vpack.c.bf16 %v2179_v63, %v2178_v2  ;;  %3067 = vmatprep.subr.bf16.mxu0 %v4536_v18  ;;  %v4551_v14 = vunpack.c.h.bf16 %v4550_v48  ;;  %v4552_v16 = vunpack.c.l.bf16 %v4550_v48 }
 0x6fb   :  { %v3068_v10 = vpack.c.bf16 %v2177_v61, %v2176_v27 }
 0x6fd   :  { %3069 = vmatpush1.bf16.msra.mxu0 %v3068_v10 }
 0x6fe   :  { %3070 = vmatprep.subr.bf16.mxu0 %v4536_v18  ;;  %v4554_v18 = vunpack.c.h.bf16 %v4553_v22 }
 0x701   :  { %3072 = vmatpush1.bf16.msra.mxu0 %v3071_v6 }
 0x704   :  { %2245 = vmatmul.mubr.f32.vlgmr.msra.gmra.mrb[54].mxu0 %v4547_v36 }
 0x705   :  { %2566 = vmatprep.mubr.msk.f32.mxu0 %vm1423_vm6, %v4548_v39 }
 0x708   :  { %2250 = vmatmul.mubr.f32.gmra.mrb[84].mxu0 %v4549_v11 }
 0x709   :  { %2567 = vmatprep.mubr.msk.f32.mxu0 %vm1423_vm6, %v4551_v14 }
 0x70c   :  { %2255 = vmatmul.mubr.f32.gmra.mrb[86].mxu0 %v4552_v16 }
 0x70d   :  { %2568 = vmatprep.mubr.msk.f32.mxu0 %vm1423_vm6, %v4554_v18 }
 0x710   :  { %2260 = vmatmul.mubr.f32.gmra.mrb[88].mxu0 %v4555_v17 }
 0x7d7   :  { %v2246_v25 = vpop.f32.mrb[54].mxu0 }
 0x7d8   :  { %v2248_v54 = vpop.f32.mrb[55].mxu0  ;;  %2967 = vmatprep.mubr.msk.f32.mxu1 %vm365_vm1, %v2246_v25 }
 0x7db   :  { %v2251_v45 = vpop.f32.mrb[84].mxu0 }
 0x7dc   :  { %2968 = vmatmul.mubr.msk.f32.vlgmr.msra.gmra.mrb[86].mxu1 %vm365_vm1, %v2251_v45  ;;  %v2253_v56 = vpop.f32.mrb[85].mxu0 }
 0x7df   :  { %v2256_v62 = vpop.f32.mrb[86].mxu0 }
 0x7e0   :  { %v2258_v1 = vpop.f32.mrb[87].mxu0  ;;  %2970 = vmatprep.mubr.msk.f32.mxu1 %vm365_vm1, %v2256_v62 }
 0x7e3   :  { %v2261_v29 = vpop.f32.mrb[88].mxu0 }
 0x7e4   :  { %2971 = vmatmul.mubr.msk.f32.gmra.mrb[88].mxu1 %vm365_vm1, %v2261_v29  ;;  %v2263_v15 = vpop.f32.mrb[89].mxu0 }
 0x8af   :  { %v2969_v23 = vpop.f32.mrb[86].mxu1 }
 0x8b0   :  { %v2366_v50 = vmul.f32 %v2969_v23, %v4556_v12  ;;  %v2346_v58 = vpop.f32.mrb[87].mxu1 }
 0x8b1   :  { %v2365_v20 = vmul.f32 %v2346_v58, %v4557_v42 }
 0x8b2   :  { %v2370_v9 = vadd.f32 %v2366_v50, %v4343_v47 }
 0x8b3   :  { %v2369_v43 = vadd.f32 %v2365_v20, %v4339_v34 }
 0x8b4   :  { %v2380_v49 = vadd.f32 %v2574_v59, %v2370_v9 }
 0x8b5   :  { %v2379_v5 = vadd.f32 %v2574_v59, %v2369_v43 }
 0x8b6   :  { %2384 = vst [vmem:[#allocation29 + $0x8] sm:$0xff] %v2380_v49 }
 0x8b7   :  { %2383 = vst [vmem:[#allocation29] sm:$0xff] %v2379_v5  ;;  %v2972_v38 = vpop.f32.mrb[88].mxu1 }
 0x8b8   :  { %v2368_v46 = vmul.f32 %v2972_v38, %v4558_v35  ;;  %v2356_v53 = vpop.f32.mrb[89].mxu1 }
 0x8b9   :  { %v2367_v28 = vmul.f32 %v2356_v53, %v4266_v13 }
 0x8ba   :  { %v2372_v40 = vadd.f32 %v4341_v44, %v2368_v46 }
 0x8bb   :  { %v2371_v52 = vadd.f32 %v4337_v32, %v2367_v28 }
 0x8bc   :  { %v2382_v19 = vadd.f32 %v2574_v59, %v2372_v40 }
 0x8bd   :  { %v2381_v47 = vadd.f32 %v2574_v59, %v2371_v52 }
 0x8be   :  { %2386 = vst [vmem:[#allocation29 + $0x18] sm:$0xff] %v2382_v19 }
 0x8bf   :  { %2385 = vst [vmem:[#allocation29 + $0x10] sm:$0xff] %v2381_v47 }
 0x8c0   :  { %3570 = shalt.err (!%p3567_p0)
}
 0x8c1   :  { %s4559_s23 = sld [smem:[#allocation52_spill]] }
 0x8c7   :  { %s3571_s17 = scalar_lea.hbm %s4559_s23, 512 }
 0x8c8   :  { %p3572_p1 = scmp.ne.s32.totalorder %s4559_s23, %s3571_s17  ;;  %p3575_p2 = scmp.lt.u32.totalorder %s3571_s17, %s4559_s23 }
 0x8ca   :  { %p3577_p3 = pnand %p3575_p2, %p3572_p1 }
 0x8cc   :  { %3580 = shalt.err (!%p3577_p3)
}
 0x8cd   :  { %2398 = dma.vmem_to_hbm [thread:$0]  %s2393_s13, 512, %s4559_s23, [#allocation4], %s3602_s20, %s3602_s20, %s3603_s21  }
 0x8ce   :  { %3599 = dma.done.wait [#allocation4], 512  }
 0x8cf   :  { %3600 = vsyncadd [#allocation4], 4294966784 }
 0x8d0   :  { %2402 = vsyncpa [#allocation3], 1 }
 0x8d1   :  { %2403 = vsyncpa [#allocation6], 1 }
 0x8d2   :  { %2404 = vsyncpa [#allocation9], 1 }
 0x8d3   :  { %2405 = vsyncpa [#allocation12], 1 }
 0x8d4   :  { %2406 = vsyncpa [#allocation15], 1 }
 0x8d5   :  { %2407 = vsyncpa [#allocation18], 1 }
 0x8d6   :  { %2408 = vsyncpa [#allocation21], 1 }
 0x8d7   :  { %2409 = vsyncpa [#allocation24], 1 }
 0x8d8   :  { %2410 = vsyncpa [#allocation27], 1 }
 0x8d9   :  { %2411 = vsyncpa [#allocation4], 1 }

</bundles_post_ra>
